<compile_context>
chip_gen: v7x
topology: tpu7x:2x2x1
jax: 0.10.0
libtpu: 0.0.40
codegen_flags: <defaults>
</compile_context>

<pallas_src>
import functools
import math

import jax
import jax.numpy as jnp
from jax import lax
from jax.experimental import pallas as pl
from jax.experimental.pallas import tpu as pltpu


def _attention_kernel(x_ref, wqkv_ref, wout_ref, bout_ref, o_ref,
                      *, heads, dim_head, scale):
    """Fused attention for one batch element.

    x_ref    : (N, C)        tokens (N = Hs*Ws spatial positions)
    wqkv_ref : (C, 3*H)      qkv projection, H = heads*dim_head
    wout_ref : (H, C)        output projection
    bout_ref : (1, C)        output projection bias
    o_ref    : (N, C)        output tokens
    """
    H = heads * dim_head
    x = x_ref[...]                                                     # (N, C)

    # qkv projection (1x1 conv, no bias) — single MXU matmul.
    qkv = jnp.dot(x, wqkv_ref[...], preferred_element_type=jnp.float32)  # (N, 3H)

    outs = []
    for h in range(heads):  # static unroll (heads is small)
        lo = h * dim_head
        qh = qkv[:, lo:lo + dim_head] * scale                          # (N, d)
        kh = qkv[:, H + lo:H + lo + dim_head]                          # (N, d)
        vh = qkv[:, 2 * H + lo:2 * H + lo + dim_head]                  # (N, d)

        # sim[i, j] = sum_d q[i, d] * k[j, d]
        sim = lax.dot_general(qh, kh, (((1,), (1,)), ((), ())),
                              preferred_element_type=jnp.float32)      # (N, N)

        # numerically-stable softmax over the last dim
        sim = sim - jnp.max(sim, axis=-1, keepdims=True)
        p = jnp.exp(sim)
        attn = p * pl.reciprocal(jnp.sum(p, axis=-1, keepdims=True),
                                 approx=False)                         # exact 1/x

        outs.append(jnp.dot(attn, vh,
                            preferred_element_type=jnp.float32))       # (N, d)

    # merge heads: column index = head * dim_head + d  (matches 'b (h d) x y')
    out = jnp.concatenate(outs, axis=-1)                               # (N, H)

    # output projection (1x1 conv with bias)
    o_ref[...] = (jnp.dot(out, wout_ref[...],
                          preferred_element_type=jnp.float32)
                  + bout_ref[...])


def attention_forward(x, w_qkv_t, w_out_t, b_out, *, heads, dim_head):
    """Runs the fused Attention forward pass on TPU via Pallas.

    x        : (B, C, Hs, Ws) float32
    w_qkv_t  : (C, 3*heads*dim_head)  (transposed 1x1-conv weight, no bias)
    w_out_t  : (heads*dim_head, C)    (transposed 1x1-conv weight)
    b_out    : (1, C)
    returns  : (B, C, Hs, Ws) float32
    """
    B, C, Hs, Ws = x.shape
    N = Hs * Ws
    H = heads * dim_head
    assert w_qkv_t.shape == (C, 3 * H)
    assert w_out_t.shape == (H, C)

    # NCHW -> token layout (B, N, C); row-major spatial flatten matches
    # rearrange('b c x y -> b (x y) c').
    x_tokens = x.reshape(B, C, N).transpose(0, 2, 1)

    kernel = functools.partial(_attention_kernel,
                               heads=heads, dim_head=dim_head,
                               scale=dim_head ** -0.5)

    out_tokens = pl.pallas_call(
        kernel,
        out_shape=jax.ShapeDtypeStruct((B, N, C), jnp.float32),
        grid_spec=pltpu.PrefetchScalarGridSpec(
            num_scalar_prefetch=0,
            grid=(B,),
            in_specs=[
                pl.BlockSpec((pl.Squeezed(), N, C), lambda b: (b, 0, 0)),
                pl.BlockSpec((C, 3 * H), lambda b: (0, 0)),
                pl.BlockSpec((H, C), lambda b: (0, 0)),
                pl.BlockSpec((1, C), lambda b: (0, 0)),
            ],
            out_specs=pl.BlockSpec((pl.Squeezed(), N, C), lambda b: (b, 0, 0)),
        ),
        compiler_params=pltpu.CompilerParams(
            dimension_semantics=("parallel",),   # batch splits across TCs on v7x
        ),
    )(x_tokens, w_qkv_t, w_out_t, b_out)

    return out_tokens.transpose(0, 2, 1).reshape(B, C, Hs, Ws)


def init_params(key, dim, heads, dim_head):
    """Deterministic synthetic parameters (conv weights stored transposed)."""
    H = heads * dim_head
    k1, k2, k3 = jax.random.split(key, 3)
    b1 = 1.0 / math.sqrt(dim)
    w_qkv_t = jax.random.uniform(k1, (dim, 3 * H), jnp.float32, -b1, b1)
    b2 = 1.0 / math.sqrt(H)
    w_out_t = jax.random.uniform(k2, (H, dim), jnp.float32, -b2, b2)
    b_out = jax.random.uniform(k3, (1, dim), jnp.float32, -b2, b2)
    return w_qkv_t, w_out_t, b_out


def _reference(x, w_qkv_t, w_out_t, b_out, *, heads, dim_head):
    """Pure-JAX mirror of the PyTorch Attention.forward."""
    B, C, Hs, Ws = x.shape
    N = Hs * Ws
    H = heads * dim_head
    scale = dim_head ** -0.5

    x_t = x.reshape(B, C, N).transpose(0, 2, 1)                 # (B, N, C)
    qkv = x_t @ w_qkv_t                                          # (B, N, 3H)
    q, k, v = qkv[..., :H], qkv[..., H:2 * H], qkv[..., 2 * H:]

    def split_heads(t):                                          # (B,N,H)->(B,h,N,d)
        return t.reshape(B, N, heads, dim_head).transpose(0, 2, 1, 3)

    q = split_heads(q) * scale
    k = split_heads(k)
    v = split_heads(v)

    sim = jnp.einsum('bhid,bhjd->bhij', q, k)
    attn = jax.nn.softmax(sim, axis=-1)
    out = jnp.einsum('bhij,bhjd->bhid', attn, v)                 # (B,h,N,d)
    out = out.transpose(0, 2, 1, 3).reshape(B, N, H)             # 'b (h d)' cols
    y = out @ w_out_t + b_out                                    # (B, N, C)
    return y.transpose(0, 2, 1).reshape(B, C, Hs, Ws)


if __name__ == "__main__":
    key = jax.random.PRNGKey(0)
    k_par, k_x = jax.random.split(key, 2)

    # small shapes consistent with the module: dim=8 channels, 8x8 spatial,
    # heads=4, dim_head=32 (module defaults) -> hidden = 128, N = 64 tokens.
    B, C, Hs, Ws = 2, 8, 8, 8
    heads, dim_head = 4, 32

    w_qkv_t, w_out_t, b_out = init_params(k_par, C, heads, dim_head)
    x = jax.random.normal(k_x, (B, C, Hs, Ws), jnp.float32)

    fwd = jax.jit(functools.partial(attention_forward,
                                    heads=heads, dim_head=dim_head))
    y = fwd(x, w_qkv_t, w_out_t, b_out)
    jax.block_until_ready(y)

    # Sanity check against the pure-JAX reference.
    y_ref = _reference(x, w_qkv_t, w_out_t, b_out,
                       heads=heads, dim_head=dim_head)
    assert jnp.allclose(y, y_ref, atol=1e-4, rtol=1e-4)

    print("KERNEL_OK")
</pallas_src>

<mosaic_0001>
module attributes {stable_mosaic.version = 11 : i64} {
  func.func @_attention_kernel(%arg0: i32, %arg1: memref<1x64x8xf32, #tpu.memory_space<vmem>>, %arg2: memref<8x384xf32, #tpu.memory_space<vmem>>, %arg3: memref<128x8xf32, #tpu.memory_space<vmem>>, %arg4: memref<1x8xf32, #tpu.memory_space<vmem>>, %arg5: memref<1x64x8xf32, #tpu.memory_space<vmem>>) attributes {dimension_semantics = [#tpu.dimension_semantics<parallel>], iteration_bounds = array<i64: 2>, scalar_prefetch = 0 : i64, scratch_operands = 0 : i64, tpu.core_type = #tpu.core_type<tc>, window_params = [{transform_indices = @transform_0, window_bounds = array<i64: 1, 64, 8>}, {pipeline_mode = #tpu.pipeline_mode<synchronous>, transform_indices = @transform_1, window_bounds = array<i64: 8, 384>}, {pipeline_mode = #tpu.pipeline_mode<synchronous>, transform_indices = @transform_2, window_bounds = array<i64: 128, 8>}, {pipeline_mode = #tpu.pipeline_mode<synchronous>, transform_indices = @transform_3, window_bounds = array<i64: 1, 8>}, {transform_indices = @transform_4, window_bounds = array<i64: 1, 64, 8>}]} {
    %c0 = arith.constant 0 : index
    %c0_0 = arith.constant 0 : index
    %c0_1 = arith.constant 0 : index
    %0 = vector.load %arg1[%c0, %c0_0, %c0_1] : memref<1x64x8xf32, #tpu.memory_space<vmem>>, vector<1x64x8xf32>
    %1 = vector.shape_cast %0 : vector<1x64x8xf32> to vector<64x8xf32>
    %c0_2 = arith.constant 0 : index
    %c0_3 = arith.constant 0 : index
    %2 = vector.load %arg2[%c0_2, %c0_3] : memref<8x384xf32, #tpu.memory_space<vmem>>, vector<8x384xf32>
    %cst = arith.constant dense<0.000000e+00> : vector<64x384xf32>
    %3 = tpu.matmul %1, %2, %cst {dimension_numbers = #tpu.dot_dimension_numbers<[1], [0], [0], [1], [0, 0, 1, 1], [], []>} : vector<64x8xf32>, vector<8x384xf32>, vector<64x384xf32> -> vector<64x384xf32>
    %4 = vector.extract_strided_slice %3 {offsets = [0, 0], sizes = [64, 32], strides = [1, 1]} : vector<64x384xf32> to vector<64x32xf32>
    %cst_4 = arith.constant 0.176776692 : f32
    %5 = vector.broadcast %cst_4 : f32 to vector<64x32xf32>
    %6 = arith.mulf %4, %5 : vector<64x32xf32>
    %7 = vector.extract_strided_slice %3 {offsets = [0, 128], sizes = [64, 32], strides = [1, 1]} : vector<64x384xf32> to vector<64x32xf32>
    %8 = vector.extract_strided_slice %3 {offsets = [0, 256], sizes = [64, 32], strides = [1, 1]} : vector<64x384xf32> to vector<64x32xf32>
    %cst_5 = arith.constant dense<0.000000e+00> : vector<64x64xf32>
    %9 = tpu.matmul %6, %7, %cst_5 {dimension_numbers = #tpu.dot_dimension_numbers<[1], [1], [0], [0], [0, 0, 1, 0], [], []>} : vector<64x32xf32>, vector<64x32xf32>, vector<64x64xf32> -> vector<64x64xf32>
    %cst_6 = arith.constant dense<0xFF800000> : vector<64xf32>
    %10 = vector.multi_reduction <maximumf>, %9, %cst_6 [1] : vector<64x64xf32> to vector<64xf32>
    %11 = vector.shape_cast %10 : vector<64xf32> to vector<64x1xf32>
    %12 = vector.broadcast %11 : vector<64x1xf32> to vector<64x64xf32>
    %13 = arith.subf %9, %12 : vector<64x64xf32>
    %14 = math.exp %13 : vector<64x64xf32>
    %cst_7 = arith.constant dense<0.000000e+00> : vector<64xf32>
    %15 = vector.multi_reduction <add>, %14, %cst_7 [1] : vector<64x64xf32> to vector<64xf32>
    %16 = vector.shape_cast %15 : vector<64xf32> to vector<64x1xf32>
    %17 = tpu.reciprocal %16 : vector<64x1xf32> -> vector<64x1xf32>
    %18 = vector.broadcast %17 : vector<64x1xf32> to vector<64x64xf32>
    %19 = arith.mulf %14, %18 : vector<64x64xf32>
    %cst_8 = arith.constant dense<0.000000e+00> : vector<64x32xf32>
    %20 = tpu.matmul %19, %8, %cst_8 {dimension_numbers = #tpu.dot_dimension_numbers<[1], [0], [0], [1], [0, 0, 1, 1], [], []>} : vector<64x64xf32>, vector<64x32xf32>, vector<64x32xf32> -> vector<64x32xf32>
    %21 = vector.extract_strided_slice %3 {offsets = [0, 32], sizes = [64, 32], strides = [1, 1]} : vector<64x384xf32> to vector<64x32xf32>
    %cst_9 = arith.constant 0.176776692 : f32
    %22 = vector.broadcast %cst_9 : f32 to vector<64x32xf32>
    %23 = arith.mulf %21, %22 : vector<64x32xf32>
    %24 = vector.extract_strided_slice %3 {offsets = [0, 160], sizes = [64, 32], strides = [1, 1]} : vector<64x384xf32> to vector<64x32xf32>
    %25 = vector.extract_strided_slice %3 {offsets = [0, 288], sizes = [64, 32], strides = [1, 1]} : vector<64x384xf32> to vector<64x32xf32>
    %cst_10 = arith.constant dense<0.000000e+00> : vector<64x64xf32>
    %26 = tpu.matmul %23, %24, %cst_10 {dimension_numbers = #tpu.dot_dimension_numbers<[1], [1], [0], [0], [0, 0, 1, 0], [], []>} : vector<64x32xf32>, vector<64x32xf32>, vector<64x64xf32> -> vector<64x64xf32>
    %cst_11 = arith.constant dense<0xFF800000> : vector<64xf32>
    %27 = vector.multi_reduction <maximumf>, %26, %cst_11 [1] : vector<64x64xf32> to vector<64xf32>
    %28 = vector.shape_cast %27 : vector<64xf32> to vector<64x1xf32>
    %29 = vector.broadcast %28 : vector<64x1xf32> to vector<64x64xf32>
    %30 = arith.subf %26, %29 : vector<64x64xf32>
    %31 = math.exp %30 : vector<64x64xf32>
    %cst_12 = arith.constant dense<0.000000e+00> : vector<64xf32>
    %32 = vector.multi_reduction <add>, %31, %cst_12 [1] : vector<64x64xf32> to vector<64xf32>
    %33 = vector.shape_cast %32 : vector<64xf32> to vector<64x1xf32>
    %34 = tpu.reciprocal %33 : vector<64x1xf32> -> vector<64x1xf32>
    %35 = vector.broadcast %34 : vector<64x1xf32> to vector<64x64xf32>
    %36 = arith.mulf %31, %35 : vector<64x64xf32>
    %cst_13 = arith.constant dense<0.000000e+00> : vector<64x32xf32>
    %37 = tpu.matmul %36, %25, %cst_13 {dimension_numbers = #tpu.dot_dimension_numbers<[1], [0], [0], [1], [0, 0, 1, 1], [], []>} : vector<64x64xf32>, vector<64x32xf32>, vector<64x32xf32> -> vector<64x32xf32>
    %38 = vector.extract_strided_slice %3 {offsets = [0, 64], sizes = [64, 32], strides = [1, 1]} : vector<64x384xf32> to vector<64x32xf32>
    %cst_14 = arith.constant 0.176776692 : f32
    %39 = vector.broadcast %cst_14 : f32 to vector<64x32xf32>
    %40 = arith.mulf %38, %39 : vector<64x32xf32>
    %41 = vector.extract_strided_slice %3 {offsets = [0, 192], sizes = [64, 32], strides = [1, 1]} : vector<64x384xf32> to vector<64x32xf32>
    %42 = vector.extract_strided_slice %3 {offsets = [0, 320], sizes = [64, 32], strides = [1, 1]} : vector<64x384xf32> to vector<64x32xf32>
    %cst_15 = arith.constant dense<0.000000e+00> : vector<64x64xf32>
    %43 = tpu.matmul %40, %41, %cst_15 {dimension_numbers = #tpu.dot_dimension_numbers<[1], [1], [0], [0], [0, 0, 1, 0], [], []>} : vector<64x32xf32>, vector<64x32xf32>, vector<64x64xf32> -> vector<64x64xf32>
    %cst_16 = arith.constant dense<0xFF800000> : vector<64xf32>
    %44 = vector.multi_reduction <maximumf>, %43, %cst_16 [1] : vector<64x64xf32> to vector<64xf32>
    %45 = vector.shape_cast %44 : vector<64xf32> to vector<64x1xf32>
    %46 = vector.broadcast %45 : vector<64x1xf32> to vector<64x64xf32>
    %47 = arith.subf %43, %46 : vector<64x64xf32>
    %48 = math.exp %47 : vector<64x64xf32>
    %cst_17 = arith.constant dense<0.000000e+00> : vector<64xf32>
    %49 = vector.multi_reduction <add>, %48, %cst_17 [1] : vector<64x64xf32> to vector<64xf32>
    %50 = vector.shape_cast %49 : vector<64xf32> to vector<64x1xf32>
    %51 = tpu.reciprocal %50 : vector<64x1xf32> -> vector<64x1xf32>
    %52 = vector.broadcast %51 : vector<64x1xf32> to vector<64x64xf32>
    %53 = arith.mulf %48, %52 : vector<64x64xf32>
    %cst_18 = arith.constant dense<0.000000e+00> : vector<64x32xf32>
    %54 = tpu.matmul %53, %42, %cst_18 {dimension_numbers = #tpu.dot_dimension_numbers<[1], [0], [0], [1], [0, 0, 1, 1], [], []>} : vector<64x64xf32>, vector<64x32xf32>, vector<64x32xf32> -> vector<64x32xf32>
    %55 = vector.extract_strided_slice %3 {offsets = [0, 96], sizes = [64, 32], strides = [1, 1]} : vector<64x384xf32> to vector<64x32xf32>
    %cst_19 = arith.constant 0.176776692 : f32
    %56 = vector.broadcast %cst_19 : f32 to vector<64x32xf32>
    %57 = arith.mulf %55, %56 : vector<64x32xf32>
    %58 = vector.extract_strided_slice %3 {offsets = [0, 224], sizes = [64, 32], strides = [1, 1]} : vector<64x384xf32> to vector<64x32xf32>
    %59 = vector.extract_strided_slice %3 {offsets = [0, 352], sizes = [64, 32], strides = [1, 1]} : vector<64x384xf32> to vector<64x32xf32>
    %cst_20 = arith.constant dense<0.000000e+00> : vector<64x64xf32>
    %60 = tpu.matmul %57, %58, %cst_20 {dimension_numbers = #tpu.dot_dimension_numbers<[1], [1], [0], [0], [0, 0, 1, 0], [], []>} : vector<64x32xf32>, vector<64x32xf32>, vector<64x64xf32> -> vector<64x64xf32>
    %cst_21 = arith.constant dense<0xFF800000> : vector<64xf32>
    %61 = vector.multi_reduction <maximumf>, %60, %cst_21 [1] : vector<64x64xf32> to vector<64xf32>
    %62 = vector.shape_cast %61 : vector<64xf32> to vector<64x1xf32>
    %63 = vector.broadcast %62 : vector<64x1xf32> to vector<64x64xf32>
    %64 = arith.subf %60, %63 : vector<64x64xf32>
    %65 = math.exp %64 : vector<64x64xf32>
    %cst_22 = arith.constant dense<0.000000e+00> : vector<64xf32>
    %66 = vector.multi_reduction <add>, %65, %cst_22 [1] : vector<64x64xf32> to vector<64xf32>
    %67 = vector.shape_cast %66 : vector<64xf32> to vector<64x1xf32>
    %68 = tpu.reciprocal %67 : vector<64x1xf32> -> vector<64x1xf32>
    %69 = vector.broadcast %68 : vector<64x1xf32> to vector<64x64xf32>
    %70 = arith.mulf %65, %69 : vector<64x64xf32>
    %cst_23 = arith.constant dense<0.000000e+00> : vector<64x32xf32>
    %71 = tpu.matmul %70, %59, %cst_23 {dimension_numbers = #tpu.dot_dimension_numbers<[1], [0], [0], [1], [0, 0, 1, 1], [], []>} : vector<64x64xf32>, vector<64x32xf32>, vector<64x32xf32> -> vector<64x32xf32>
    %72 = tpu.concatenate %20, %37, %54, %71 in 1 : vector<64x32xf32>, vector<64x32xf32>, vector<64x32xf32>, vector<64x32xf32> -> vector<64x128xf32>
    %c0_24 = arith.constant 0 : index
    %c0_25 = arith.constant 0 : index
    %73 = vector.load %arg3[%c0_24, %c0_25] : memref<128x8xf32, #tpu.memory_space<vmem>>, vector<128x8xf32>
    %cst_26 = arith.constant dense<0.000000e+00> : vector<64x8xf32>
    %74 = tpu.matmul %72, %73, %cst_26 {dimension_numbers = #tpu.dot_dimension_numbers<[1], [0], [0], [1], [0, 0, 1, 1], [], []>} : vector<64x128xf32>, vector<128x8xf32>, vector<64x8xf32> -> vector<64x8xf32>
    %c0_27 = arith.constant 0 : index
    %c0_28 = arith.constant 0 : index
    %75 = vector.load %arg4[%c0_27, %c0_28] : memref<1x8xf32, #tpu.memory_space<vmem>>, vector<1x8xf32>
    %76 = vector.broadcast %75 : vector<1x8xf32> to vector<64x8xf32>
    %77 = arith.addf %74, %76 : vector<64x8xf32>
    %c0_29 = arith.constant 0 : index
    %c0_30 = arith.constant 0 : index
    %c0_31 = arith.constant 0 : index
    %78 = vector.load %arg5[%c0_29, %c0_30, %c0_31] : memref<1x64x8xf32, #tpu.memory_space<vmem>>, vector<1x64x8xf32>
    %79 = vector.shape_cast %78 : vector<1x64x8xf32> to vector<64x8xf32>
    %80 = vector.shape_cast %77 : vector<64x8xf32> to vector<1x64x8xf32>
    tpu.vector_store %arg5[%c0_29, %c0_30, %c0_31], %80 {strides = array<i32>} : memref<1x64x8xf32, #tpu.memory_space<vmem>>, vector<1x64x8xf32>,
    return
  }
  func.func @transform_0(%arg0: i32) -> (i32, i32, i32) {
    %c0_i32 = arith.constant 0 : i32
    %c0_i32_0 = arith.constant 0 : i32
    %c0_i32_1 = arith.constant 0 : i32
    return %arg0, %c0_i32, %c0_i32_0 : i32, i32, i32
  }
  func.func @transform_1(%arg0: i32) -> (i32, i32) {
    %c0_i32 = arith.constant 0 : i32
    %c0_i32_0 = arith.constant 0 : i32
    %c0_i32_1 = arith.constant 0 : i32
    return %c0_i32, %c0_i32_0 : i32, i32
  }
  func.func @transform_2(%arg0: i32) -> (i32, i32) {
    %c0_i32 = arith.constant 0 : i32
    %c0_i32_0 = arith.constant 0 : i32
    %c0_i32_1 = arith.constant 0 : i32
    return %c0_i32, %c0_i32_0 : i32, i32
  }
  func.func @transform_3(%arg0: i32) -> (i32, i32) {
    %c0_i32 = arith.constant 0 : i32
    %c0_i32_0 = arith.constant 0 : i32
    %c0_i32_1 = arith.constant 0 : i32
    return %c0_i32, %c0_i32_0 : i32, i32
  }
  func.func @transform_4(%arg0: i32) -> (i32, i32, i32) {
    %c0_i32 = arith.constant 0 : i32
    %c0_i32_0 = arith.constant 0 : i32
    %c0_i32_1 = arith.constant 0 : i32
    return %arg0, %c0_i32, %c0_i32_0 : i32, i32, i32
  }
}

</mosaic_0001>

<bundles_post_ra>
// kernel: attention_forward.1
= control target key start
LH: loop header
LB: loop body
LE: loop exit
PB: predicated region body
PF: predicated region fallthrough
CT: control target
= control target key end

     0   :  { %s3500_s15 = smov 0   ;;  %s4288_s0 = inlined_call_operand.vmem [shape: f32[2,64,8], index: 0, kind: input, shape index: {}]   ;;  %s4289_s1 = inlined_call_operand.vmem [shape: f32[8,384], index: 1, kind: input, shape index: {}]   ;;  %s4290_s2 = inlined_call_operand.vmem [shape: f32[128,8], index: 2, kind: input, shape index: {}]   ;;  %s4291_s3 = inlined_call_operand.vmem [shape: f32[1,8], index: 3, kind: input, shape index: {}]   ;;  %s4292_s4 = inlined_call_operand.vmem [shape: f32[2,64,8], index: 4, kind: output, shape index: {}]  }
   0x1 LB: > { %s2382_s16 = sadd.s32 4294967295, %s3469_s15   ;;  %p2386_p0 = scmp.ge.s32.totalorder %s3469_s15, 1  ;;  %s3469_s15 = sphi %s3500_s15, %s14_s15  }
   0x2   : > { %p162_p1 = scmp.lt.s32.totalorder %s3469_s15, 3 }
   0x4   : > { %p163_p2 = pnand %p2386_p0, %p162_p1 }
   0x5   : > { %v207_v0 = vld [vmem:[%s4289_s1 + $0x8] sm:$0xff] (!%p163_p2)  ;;  %v206_v1 = vld [vmem:[%s4289_s1] sm:$0xff] (!%p163_p2)  ;;  %p188_p3 = scmp.lt.s32.totalorder (!%p163_p2), %s2382_s16, 1  ;;  %v3471_v2 = vmov (!%p163_p2), 0.0   ;;  %vm209_vm0 = vcmask (!%p163_p2), 64512   ;;  %v208_v11 = vld [vmem:[%s4289_s1 + $0x10] sm:$0xff] (!%p163_p2) }
   0x6   : > { %166 = sbr.rel (%p163_p2) target bundleno = 2713 (0xa99), region = 36  ;;  %234 = vmatprep.subr.mxu0 (!%p163_p2), %v207_v0  ;;  %298 = vmatprep.mubr.f32.mxu0 (!%p163_p2), %v3471_v2  ;;  %vm460_vm1 = vcmask (!%p163_p2), 261120   ;;  %vm614_vm3 = vcmask (!%p163_p2), 523264   ;;  %s3472_s27 = smov (!%p163_p2), 96   ;;  %vm2182_vm4 = vcmask (!%p163_p2), 785408  }
   0x7   : > { %235 = vmatpush1.msra.mxu0 (!%p163_p2), %v206_v1  ;;  %2669 = vmatprep.subr.mxu1 (!%p163_p2), %v208_v11  ;;  %vm3547_vm2 = vmpackc.low (!%p163_p2), %vm460_vm1, %vm460_vm1  ;;  %s3473_s28 = smov (!%p163_p2), 64   ;;  %s3474_s29 = smov (!%p163_p2), 32  }
   0x8   : > { %2670 = vmatpush3.msra.mxu1 (!%p163_p2), %v208_v11 }
   0xd   : > { %s4296_s16 = smov (!%p188_p3, %s2382_s16), 1 }
   0xe   : > { %s2506_s21 = sshll.u32 %s4296_s16, 6 }
   0xf   : > { %s192_s24 = scalar_lea.vmem %s4288_s0, %s2506_s21  ;;  %s197_s19 = scalar_lea.vmem %s4292_s4, %s2506_s21 }
  0x10   : > { %v198_v3 = vld [vmem:[%s192_s24] sm:$0xff]  ;;  %v199_v4 = vld [vmem:[%s192_s24 + $0x8] sm:$0xff]  ;;  %v200_v5 = vld [vmem:[%s192_s24 + $0x10] sm:$0xff] }
  0x11   : > { %2391 = vmatmul.mubr.msk.f32.vlgmr.msra.gmra.mrb[0].mxu0 %vm209_vm0, %v198_v3  ;;  %2671 = vmatprep.mubr.msk.f32.mxu1 %vm209_vm0, %v198_v3  ;;  %v201_v6 = vld [vmem:[%s192_s24 + $0x18] sm:$0xff]  ;;  %v202_v7 = vld [vmem:[%s192_s24 + $0x20] sm:$0xff]  ;;  %v203_v8 = vld [vmem:[%s192_s24 + $0x28] sm:$0xff] }
  0x12   : > { %304 = vmatprep.mubr.f32.mxu0 %v3471_v2  ;;  %v204_v9 = vld [vmem:[%s192_s24 + $0x30] sm:$0xff]  ;;  %v205_v10 = vld [vmem:[%s192_s24 + $0x38] sm:$0xff]  ;;  %2672 = vmatmul.mubr.msk.f32.vlgmr.msra.gmra.mrb[0].mxu1 %vm209_vm0, %v199_v4 }
  0x13   : > { %2674 = vmatprep.mubr.msk.f32.mxu1 %vm209_vm0, %v200_v5 }
  0x15   : > { %2392 = vmatmul.mubr.msk.f32.gmra.mrb[2].mxu0 %vm209_vm0, %v199_v4 }
  0x16   : > { %310 = vmatprep.mubr.f32.mxu0 %v3471_v2  ;;  %2675 = vmatmul.mubr.msk.f32.gmra.mrb[2].mxu1 %vm209_vm0, %v201_v6 }
  0x17   : > { %2677 = vmatprep.mubr.msk.f32.mxu1 %vm209_vm0, %v202_v7 }
  0x19   : > { %2393 = vmatmul.mubr.msk.f32.gmra.mrb[4].mxu0 %vm209_vm0, %v200_v5 }
  0x1a   : > { %316 = vmatprep.mubr.f32.mxu0 %v3471_v2  ;;  %2678 = vmatmul.mubr.msk.f32.gmra.mrb[4].mxu1 %vm209_vm0, %v203_v8 }
  0x1b   : > { %2680 = vmatprep.mubr.msk.f32.mxu1 %vm209_vm0, %v204_v9 }
  0x1d   : > { %2394 = vmatmul.mubr.msk.f32.gmra.mrb[6].mxu0 %vm209_vm0, %v201_v6 }
  0x1e   : > { %322 = vmatprep.mubr.f32.mxu0 %v3471_v2  ;;  %2681 = vmatmul.mubr.msk.f32.gmra.mrb[6].mxu1 %vm209_vm0, %v205_v10 }
  0x21   : > { %2395 = vmatmul.mubr.msk.f32.gmra.mrb[8].mxu0 %vm209_vm0, %v202_v7 }
  0x22   : > { %328 = vmatprep.mubr.f32.mxu0 %v3471_v2 }
  0x25   : > { %2396 = vmatmul.mubr.msk.f32.gmra.mrb[10].mxu0 %vm209_vm0, %v203_v8 }
  0x26   : > { %334 = vmatprep.mubr.f32.mxu0 %v3471_v2 }
  0x29   : > { %2397 = vmatmul.mubr.msk.f32.gmra.mrb[12].mxu0 %vm209_vm0, %v204_v9 }
  0x2a   : > { %340 = vmatprep.mubr.f32.mxu0 %v3471_v2 }
  0x2d   : > { %2398 = vmatmul.mubr.msk.f32.gmra.mrb[14].mxu0 %vm209_vm0, %v205_v10 }
  0xe4   : > { %v300_v12 = vpop.f32.mrb[0].mxu0 }
  0xe5   : > { %v3541_v13 = vmul.f32 0.17677669, %v300_v12  ;;  %v302_v14 = vpop.f32.mrb[1].mxu0  ;;  %v2673_v61 = vpop.f32.mrb[0].mxu1 }
  0xe6   : > { %v413_v62 = vpop.f32.mrb[1].mxu1 }
  0xe7   : > { %2699 = vmatprep.mubr.msk.f32.mxu0 %vm460_vm1, %v3541_v13  ;;  %v2975_v63 = vpack.c.bf16 %v2673_v61, %v413_v62  ;;  %v3629_v1 = vpack.i.bf16 %v2673_v61, %v413_v62 }
  0xe8   : > { %v306_v15 = vpop.f32.mrb[2].mxu0 }
  0xe9   : > { %v308_v16 = vpop.f32.mrb[3].mxu0  ;;  %v3575_v38 = vmul.f32 0.17677669, %v306_v15  ;;  %v2676_v0 = vpop.f32.mrb[2].mxu1  ;;  %2976 = vmatprep.subr.bf16.mxu1 %v2975_v63 }
  0xea   : > { %v2951_v18 = vpack.c.bf16 %v308_v16, %v302_v14  ;;  %v3551_v19 = vpack.i.bf16 %v308_v16, %v302_v14  ;;  %v423_v2 = vpop.f32.mrb[3].mxu1  ;;  %2978 = vmatpush3.bf16.msra.mxu1 %v2975_v63 }
  0xeb   : > { %v2979_v3 = vpack.c.bf16 %v2676_v0, %v423_v2  ;;  %v3631_v4 = vpack.i.bf16 %v2676_v0, %v423_v2 }
  0xec   : > { %v312_v20 = vpop.f32.mrb[4].mxu0  ;;  %2953 = vmatprep.subr.msk.bf16.mxu0 %vm3547_vm2, %v2951_v18 }
  0xed   : > { %v314_v21 = vpop.f32.mrb[5].mxu0  ;;  %2956 = vmatpush3.bf16.xpose.msk.msra.mxu0 %vm3547_vm2, %v2951_v18  ;;  %v3577_v39 = vmul.f32 0.17677669, %v312_v20  ;;  %v2679_v5 = vpop.f32.mrb[4].mxu1  ;;  %2980 = vmatprep.subr.bf16.mxu1 %v2979_v3 }
  0xee   : > { %v433_v6 = vpop.f32.mrb[5].mxu1  ;;  %2982 = vmatpush3.bf16.msra.mxu1 %v2979_v3 }
  0xef   : > { %v2983_v7 = vpack.c.bf16 %v2679_v5, %v433_v6  ;;  %v3633_v8 = vpack.i.bf16 %v2679_v5, %v433_v6 }
  0xf0   : > { %v318_v22 = vpop.f32.mrb[6].mxu0 }
  0xf1   : > { %v320_v23 = vpop.f32.mrb[7].mxu0  ;;  %v3583_v40 = vmul.f32 0.17677669, %v318_v22  ;;  %v2682_v9 = vpop.f32.mrb[6].mxu1  ;;  %2984 = vmatprep.subr.bf16.mxu1 %v2983_v7 }
  0xf2   : > { %v2957_v24 = vpack.c.bf16 %v320_v23, %v314_v21  ;;  %v3557_v25 = vpack.i.bf16 %v320_v23, %v314_v21  ;;  %v443_v10 = vpop.f32.mrb[7].mxu1  ;;  %2986 = vmatpush3.bf16.msra.mxu1 %v2983_v7 }
  0xf3   : > { %v2987_v11 = vpack.c.bf16 %v2682_v9, %v443_v10  ;;  %v3637_v12 = vpack.i.bf16 %v2682_v9, %v443_v10 }
  0xf4   : > { %v324_v26 = vpop.f32.mrb[8].mxu0  ;;  %2959 = vmatprep.subr.msk.bf16.mxu0 %vm3547_vm2, %v2957_v24 }
  0xf5   : > { %v326_v27 = vpop.f32.mrb[9].mxu0  ;;  %2962 = vmatpush3.bf16.xpose.msk.msra.mxu0 %vm3547_vm2, %v2957_v24  ;;  %v3585_v41 = vmul.f32 0.17677669, %v324_v26  ;;  %2988 = vmatprep.subr.bf16.mxu1 %v2987_v11 }
  0xf6   : > { %2990 = vmatpush3.bf16.msra.mxu1 %v2987_v11 }
  0xf8   : > { %v330_v28 = vpop.f32.mrb[10].mxu0 }
  0xf9   : > { %v332_v29 = vpop.f32.mrb[11].mxu0  ;;  %v3591_v42 = vmul.f32 0.17677669, %v330_v28 }
  0xfa   : > { %v2963_v30 = vpack.c.bf16 %v332_v29, %v326_v27  ;;  %v3563_v31 = vpack.i.bf16 %v332_v29, %v326_v27 }
  0xfc   : > { %v336_v32 = vpop.f32.mrb[12].mxu0  ;;  %2965 = vmatprep.subr.msk.bf16.mxu0 %vm3547_vm2, %v2963_v30 }
  0xfd   : > { %v338_v33 = vpop.f32.mrb[13].mxu0  ;;  %2968 = vmatpush3.bf16.xpose.msk.msra.mxu0 %vm3547_vm2, %v2963_v30  ;;  %v3593_v43 = vmul.f32 0.17677669, %v336_v32 }
 0x100   : > { %v342_v34 = vpop.f32.mrb[14].mxu0 }
 0x101   : > { %v344_v35 = vpop.f32.mrb[15].mxu0  ;;  %v3599_v44 = vmul.f32 0.17677669, %v342_v34 }
 0x102   : > { %v2969_v36 = vpack.c.bf16 %v344_v35, %v338_v33  ;;  %v3569_v37 = vpack.i.bf16 %v344_v35, %v338_v33 }
 0x104   : > { %2971 = vmatprep.subr.msk.bf16.mxu0 %vm3547_vm2, %v2969_v36 }
 0x105   : > { %2974 = vmatpush3.bf16.xpose.msk.msra.mxu0 %vm3547_vm2, %v2969_v36 }
 0x10c   : > { %2700 = vmatmul.mubr.msk.f32.vlgmr.msra.gmra.mrb[16].mxu0 %vm460_vm1, %v3575_v38 }
 0x10d   : > { %2702 = vmatprep.mubr.msk.f32.mxu0 %vm460_vm1, %v3577_v39 }
 0x110   : > { %2703 = vmatmul.mubr.msk.f32.gmra.mrb[18].mxu0 %vm460_vm1, %v3583_v40 }
 0x111   : > { %2705 = vmatprep.mubr.msk.f32.mxu0 %vm460_vm1, %v3585_v41 }
 0x114   : > { %2706 = vmatmul.mubr.msk.f32.gmra.mrb[20].mxu0 %vm460_vm1, %v3591_v42 }
 0x115   : > { %2708 = vmatprep.mubr.msk.f32.mxu0 %vm460_vm1, %v3593_v43 }
 0x118   : > { %2709 = vmatmul.mubr.msk.f32.gmra.mrb[22].mxu0 %vm460_vm1, %v3599_v44 }
 0x1df   : > { %v2701_v45 = vpop.f32.mrb[16].mxu0 }
 0x1e0   : > { %v575_v46 = vpop.f32.mrb[17].mxu0  ;;  %v618_v47 = vsel %vm614_vm3, %v2701_v45, -inf }
 0x1e1   : > { %619 = vmax.xlane.f32.xlu0 %v618_v47  ;;  %v615_v50 = vsel %vm614_vm3, %v575_v46, -inf }
 0x1e3   : > { %v3604_v48 = vpop.f32.mrb[18].mxu0 }
 0x1e4   : > { %v3606_v49 = vpop.f32.mrb[19].mxu0  ;;  %v624_v51 = vsel %vm614_vm3, %v3604_v48, -inf }
 0x1e5   : > { %616 = vmax.xlane.f32.xlu0 %v615_v50  ;;  %625 = vmax.xlane.f32.xlu1 %v624_v51  ;;  %v621_v54 = vsel %vm614_vm3, %v3606_v49, -inf }
 0x1e7   : > { %v3611_v52 = vpop.f32.mrb[20].mxu0 }
 0x1e8   : > { %v3613_v53 = vpop.f32.mrb[21].mxu0  ;;  %v630_v58 = vsel %vm614_vm3, %v3611_v52, -inf }
 0x1e9   : > { %622 = vmax.xlane.f32.xlu1 %v621_v54  ;;  %v627_v55 = vsel %vm614_vm3, %v3613_v53, -inf }
 0x1ea   : > { %628 = vmax.xlane.f32.xlu0 %v627_v55 }
 0x1eb   : > { %v3619_v56 = vpop.f32.mrb[22].mxu0 }
 0x1ec   : > { %v3621_v57 = vpop.f32.mrb[23].mxu0  ;;  %v636_v60 = vsel %vm614_vm3, %v3619_v56, -inf }
 0x1ed   : > { %631 = vmax.xlane.f32.xlu1 %v630_v58  ;;  %v633_v59 = vsel %vm614_vm3, %v3621_v57, -inf }
 0x1ee   : > { %634 = vmax.xlane.f32.xlu0 %v633_v59 }
 0x1f1   : > { %637 = vmax.xlane.f32.xlu1 %v636_v60 }
 0x202   : > { %3161 = vrot.lane.b32.xlu1 %v3557_v25, %s3472_s27 }
 0x204   : > { %3156 = vrot.lane.b32.xlu0 %v3551_v19, %s3472_s27 }
 0x26e   : > { %v620_v14 = vpop.xlane.xlu0 %619 }
 0x26f   : > { %v640_v15 = vsub.f32 %v2701_v45, %v620_v14 }
 0x271   : > { %v649_v16 = vmul.f32 1.442695, %v640_v15 }
 0x272   : > { %v617_v18 = vpop.xlane.xlu0 %616  ;;  %v626_v34 = vpop.xlane.xlu1 %625 }
 0x273   : > { %3335 = vpow2.f32 %v649_v16  ;;  %v639_v20 = vsub.f32 %v575_v46, %v617_v18  ;;  %v642_v36 = vsub.f32 %v3604_v48, %v626_v34 }
 0x275   : > { %v647_v21 = vmul.f32 1.442695, %v639_v20  ;;  %v653_v47 = vmul.f32 1.442695, %v642_v36 }
 0x276   : > { %v623_v35 = vpop.xlane.xlu1 %622 }
 0x277   : > { %3337 = vpow2.f32 %v647_v21  ;;  %v629_v22 = vpop.xlane.xlu0 %628  ;;  %v641_v46 = vsub.f32 %v3606_v49, %v623_v35 }
 0x278   : > { %3339 = vpow2.f32 %v653_v47  ;;  %v643_v54 = vsub.f32 %v3613_v53, %v629_v22 }
 0x279   : > { %v651_v51 = vmul.f32 1.442695, %v641_v46 }
 0x27a   : > { %v632_v45 = vpop.xlane.xlu1 %631  ;;  %v655_v58 = vmul.f32 1.442695, %v643_v54 }
 0x27b   : > { %v635_v23 = vpop.xlane.xlu0 %634  ;;  %v644_v50 = vsub.f32 %v3611_v52, %v632_v45  ;;  %3341 = vpow2.f32 %v651_v51 }
 0x27c   : > { %v645_v2 = vsub.f32 %v3621_v57, %v635_v23 }
 0x27d   : > { %v3641_v24 = vpop.eup %3335  ;;  %v657_v55 = vmul.f32 1.442695, %v644_v50 }
 0x27e   : > { %v666_v26 = vsel %vm614_vm3, %v3641_v24, 0.0  ;;  %v638_v63 = vpop.xlane.xlu1 %637  ;;  %v659_v5 = vmul.f32 1.442695, %v645_v2 }
 0x27f   : > { %667 = vadd.xlane.f32.xlu1 %v666_v26  ;;  %v3157_v27 = vpop.permute.xlu0 %3156  ;;  %3343 = vpow2.f32 %v657_v55  ;;  %v646_v0 = vsub.f32 %v3619_v56, %v638_v63 }
 0x280   : > { %v3159_v28 = vunpack.i.h.bf16 %v3157_v27  ;;  %v3158_v29 = vunpack.i.l.bf16 %v3157_v27  ;;  %3345 = vpow2.f32 %v655_v58 }
 0x281   : > { %v3645_v30 = vpop.eup %3337  ;;  %v661_v3 = vmul.f32 1.442695, %v646_v0 }
 0x282   : > { %v3647_v32 = vpack.c.bf16 %v3159_v28, %v3158_v29  ;;  %v663_v33 = vsel %vm614_vm3, %v3645_v30, 0.0  ;;  %v3662_v59 = vpop.eup %3339  ;;  %v3162_v9 = vpop.permute.xlu1 %3161 }
 0x283   : > { %664 = vadd.xlane.f32.xlu0 %v663_v33  ;;  %v672_v48 = vsel %vm614_vm3, %v3662_v59, 0.0  ;;  %3347 = vpow2.f32 %v661_v3  ;;  %v3164_v22 = vunpack.i.h.bf16 %v3162_v9  ;;  %v3163_v23 = vunpack.i.l.bf16 %v3162_v9 }
 0x284   : > { %2993 = vmatprep.subr.msk.bf16.mxu1 %vm3547_vm2, %v3647_v32  ;;  %3349 = vpow2.f32 %v659_v5 }
 0x285   : > { %v3664_v60 = vpop.eup %3341  ;;  %v2997_v28 = vpack.c.bf16 %v3164_v22, %v3163_v23 }
 0x286   : > { %v669_v53 = vsel %vm614_vm3, %v3664_v60, 0.0 }
 0x289   : > { %v3668_v49 = vpop.eup %3343 }
 0x28a   : > { %v678_v52 = vsel %vm614_vm3, %v3668_v49, 0.0  ;;  %v3674_v61 = vpop.eup %3345 }
 0x28b   : > { %v675_v62 = vsel %vm614_vm3, %v3674_v61, 0.0 }
 0x28d   : > { %v3694_v6 = vpop.eup %3347 }
 0x28e   : > { %v684_v56 = vsel %vm614_vm3, %v3694_v6, 0.0  ;;  %v3700_v57 = vpop.eup %3349 }
 0x28f   : > { %v681_v7 = vsel %vm614_vm3, %v3700_v57, 0.0 }
 0x290   : > { %3171 = vrot.lane.b32.xlu1 %v3551_v19, %s3473_s28 }
 0x299   : > { %3166 = vrot.lane.b32.xlu0 %v3563_v31, %s3472_s27 }
 0x2b4   : > { %673 = vadd.xlane.f32.xlu1 %v672_v48 }
 0x2b8   : > { %679 = vadd.xlane.f32.xlu1 %v678_v52  ;;  %670 = vadd.xlane.f32.xlu0 %v669_v53 }
 0x2bc   : > { %676 = vadd.xlane.f32.xlu0 %v675_v62 }
 0x2c9   : > { %3181 = vrot.lane.b32.xlu1 %v3557_v25, %s3473_s28 }
 0x2d2   : > { %3176 = vrot.lane.b32.xlu0 %v3569_v37, %s3472_s27 }
 0x2d6   : > { %832 = vrot.lane.b32.xlu0 %v3541_v13, %s3472_s27 }
 0x2da   : > { %3186 = vrot.lane.b32.xlu0 %v3563_v31, %s3473_s28 }
 0x2de   : > { %838 = vrot.lane.b32.xlu0 %v3583_v40, %s3472_s27 }
 0x2e2   : > { %840 = vrot.lane.b32.xlu0 %v3585_v41, %s3472_s27 }
 0x2e6   : > { %844 = vrot.lane.b32.xlu0 %v3593_v43, %s3472_s27 }
 0x2ea   : > { %1250 = vrot.lane.b32.xlu0 %v3541_v13, %s3473_s28 }
 0x2ed   : > { %685 = vadd.xlane.f32.xlu1 %v684_v56 }
 0x2ee   : > { %1254 = vrot.lane.b32.xlu0 %v3577_v39, %s3473_s28 }
 0x2f1   : > { %682 = vadd.xlane.f32.xlu1 %v681_v7 }
 0x2f2   : > { %1258 = vrot.lane.b32.xlu0 %v3585_v41, %s3473_s28 }
 0x2f6   : > { %1262 = vrot.lane.b32.xlu0 %v3593_v43, %s3473_s28 }
 0x302   : > { %834 = vrot.lane.b32.xlu1 %v3575_v38, %s3472_s27 }
 0x306   : > { %836 = vrot.lane.b32.xlu1 %v3577_v39, %s3472_s27 }
 0x30a   : > { %3191 = vrot.lane.b32.xlu1 %v3569_v37, %s3473_s28 }
 0x30c   : > { %v668_v10 = vpop.xlane.xlu1 %667 }
 0x30d   : > { %3351 = vrcp.f32 %v668_v10 }
 0x30e   : > { %842 = vrot.lane.b32.xlu1 %v3591_v42, %s3472_s27 }
 0x310   : > { %v3172_v11 = vpop.permute.xlu1 %3171  ;;  %v665_v14 = vpop.xlane.xlu0 %664 }
 0x311   : > { %v3174_v15 = vunpack.i.h.bf16 %v3172_v11  ;;  %v3173_v16 = vunpack.i.l.bf16 %v3172_v11  ;;  %3353 = vrcp.f32 %v665_v14 }
 0x312   : > { %846 = vrot.lane.b32.xlu1 %v3599_v44, %s3472_s27 }
 0x313   : > { %v3031_v18 = vpack.c.bf16 %v3174_v15, %v3173_v16 }
 0x314   : > { %v3167_v29 = vpop.permute.xlu0 %3166 }
 0x315   : > { %3033 = vmatprep.subr.msk.bf16.mxu0 %vm3547_vm2, %v3031_v18 }
 0x316   : > { %3036 = vmatpush3.bf16.xpose.msk.msra.mxu0 %vm3547_vm2, %v3031_v18  ;;  %1252 = vrot.lane.b32.xlu1 %v3575_v38, %s3473_s28 }
 0x317   : > { %v3352_v20 = vpop.eup %3351 }
 0x318   : > { %v696_v27 = vmul.f32 %v3352_v20, %v3641_v24  ;;  %v3169_v24 = vunpack.i.h.bf16 %v3167_v29 }
 0x31a   : > { %1256 = vrot.lane.b32.xlu1 %v3583_v40, %s3473_s28 }
 0x31b   : > { %v3354_v21 = vpop.eup %3353 }
 0x31c   : > { %v695_v26 = vmul.f32 %v3354_v21, %v3645_v30  ;;  %v3168_v30 = vunpack.i.l.bf16 %v3167_v29 }
 0x31e   : > { %1260 = vrot.lane.b32.xlu1 %v3591_v42, %s3473_s28  ;;  %2727 = vmatprep.mubr.msk.f32.mxu1 %vm614_vm3, %v695_v26  ;;  %v3003_v33 = vpack.c.bf16 %v3169_v24, %v3168_v30 }
 0x31f   : > { %2728 = vmatmul.mubr.msk.f32.vlgmr.msra.gmra.mrb[8].mxu1 %vm614_vm3, %v696_v27 }
 0x320   : > { %2996 = vmatpush3.bf16.xpose.msk.msra.mxu1 %vm3547_vm2, %v3647_v32 }
 0x321   : > { %2999 = vmatprep.subr.msk.bf16.mxu1 %vm3547_vm2, %v2997_v28 }
 0x322   : > { %1264 = vrot.lane.b32.xlu1 %v3599_v44, %s3473_s28 }
 0x328   : > { %3002 = vmatpush3.bf16.xpose.msk.msra.mxu1 %vm3547_vm2, %v2997_v28 }
 0x329   : > { %3005 = vmatprep.subr.msk.bf16.mxu1 %vm3547_vm2, %v3003_v33 }
 0x330   : > { %3008 = vmatpush3.bf16.xpose.msk.msra.mxu1 %vm3547_vm2, %v3003_v33 }
 0x341   : > { %v674_v34 = vpop.xlane.xlu1 %673 }
 0x342   : > { %3355 = vrcp.f32 %v674_v34 }
 0x345   : > { %v680_v32 = vpop.xlane.xlu1 %679  ;;  %v671_v35 = vpop.xlane.xlu0 %670 }
 0x346   : > { %3357 = vrcp.f32 %v671_v35 }
 0x347   : > { %3359 = vrcp.f32 %v680_v32 }
 0x349   : > { %v3182_v36 = vpop.permute.xlu1 %3181  ;;  %v677_v45 = vpop.xlane.xlu0 %676 }
 0x34a   : > { %v3184_v46 = vunpack.i.h.bf16 %v3182_v36  ;;  %v3183_v47 = vunpack.i.l.bf16 %v3182_v36  ;;  %3361 = vrcp.f32 %v677_v45 }
 0x34c   : > { %v3037_v50 = vpack.c.bf16 %v3184_v46, %v3183_v47  ;;  %v3356_v58 = vpop.eup %3355 }
 0x34d   : > { %v3177_v51 = vpop.permute.xlu0 %3176  ;;  %v698_v0 = vmul.f32 %v3356_v58, %v3662_v59 }
 0x34e   : > { %v3179_v54 = vunpack.i.h.bf16 %v3177_v51  ;;  %v3178_v55 = vunpack.i.l.bf16 %v3177_v51  ;;  %3039 = vmatprep.subr.msk.bf16.mxu0 %vm3547_vm2, %v3037_v50 }
 0x34f   : > { %3042 = vmatpush3.bf16.xpose.msk.msra.mxu0 %vm3547_vm2, %v3037_v50 }
 0x350   : > { %v3009_v48 = vpack.c.bf16 %v3179_v54, %v3178_v55  ;;  %v3358_v52 = vpop.eup %3357 }
 0x351   : > { %v833_v53 = vpop.permute.xlu0 %832  ;;  %v697_v62 = vmul.f32 %v3358_v52, %v3664_v60  ;;  %v3360_v63 = vpop.eup %3359 }
 0x352   : > { %3011 = vmatprep.subr.msk.bf16.mxu1 %vm3547_vm2, %v3009_v48  ;;  %v700_v60 = vmul.f32 %v3360_v63, %v3668_v49 }
 0x353   : > { %3014 = vmatpush3.bf16.xpose.msk.msra.mxu1 %vm3547_vm2, %v3009_v48  ;;  %2730 = vmatprep.mubr.msk.f32.mxu1 %vm614_vm3, %v697_v62 }
 0x354   : > { %v3362_v2 = vpop.eup %3361  ;;  %2731 = vmatmul.mubr.msk.f32.gmra.mrb[10].mxu1 %vm614_vm3, %v698_v0 }
 0x355   : > { %v3187_v3 = vpop.permute.xlu0 %3186  ;;  %v699_v5 = vmul.f32 %v3362_v2, %v3674_v61 }
 0x356   : > { %v3189_v56 = vunpack.i.h.bf16 %v3187_v3  ;;  %v3188_v7 = vunpack.i.l.bf16 %v3187_v3 }
 0x357   : > { %2733 = vmatprep.mubr.msk.f32.mxu1 %vm614_vm3, %v699_v5 }
 0x358   : > { %v3043_v9 = vpack.c.bf16 %v3189_v56, %v3188_v7  ;;  %2734 = vmatmul.mubr.msk.f32.gmra.mrb[12].mxu1 %vm614_vm3, %v700_v60 }
 0x359   : > { %v839_v10 = vpop.permute.xlu0 %838 }
 0x35a   : > { %3045 = vmatprep.subr.msk.bf16.mxu0 %vm3547_vm2, %v3043_v9 }
 0x35b   : > { %3048 = vmatpush3.bf16.xpose.msk.msra.mxu0 %vm3547_vm2, %v3043_v9 }
 0x35d   : > { %v841_v59 = vpop.permute.xlu0 %840 }
 0x361   : > { %v845_v11 = vpop.permute.xlu0 %844 }
 0x365   : > { %v1251_v14 = vpop.permute.xlu0 %1250 }
 0x366   : > { %2811 = vmatprep.mubr.msk.f32.mxu0 %vm460_vm1, %v1251_v14 }
 0x37a   : > { %v686_v61 = vpop.xlane.xlu1 %685 }
 0x37b   : > { %3363 = vrcp.f32 %v686_v61 }
 0x37e   : > { %v683_v15 = vpop.xlane.xlu1 %682 }
 0x37f   : > { %3365 = vrcp.f32 %v683_v15 }
 0x382   : > { %v835_v49 = vpop.permute.xlu1 %834 }
 0x385   : > { %v3364_v18 = vpop.eup %3363 }
 0x386   : > { %v837_v16 = vpop.permute.xlu1 %836  ;;  %v702_v27 = vmul.f32 %v3364_v18, %v3694_v6  ;;  %v1255_v6 = vpop.permute.xlu0 %1254 }
 0x389   : > { %v3366_v20 = vpop.eup %3365 }
 0x38a   : > { %v3192_v21 = vpop.permute.xlu1 %3191  ;;  %v701_v22 = vmul.f32 %v3366_v20, %v3700_v57  ;;  %v1259_v30 = vpop.permute.xlu0 %1258 }
 0x38b   : > { %v3194_v23 = vunpack.i.h.bf16 %v3192_v21  ;;  %v3193_v26 = vunpack.i.l.bf16 %v3192_v21 }
 0x38c   : > { %2736 = vmatprep.mubr.msk.f32.mxu1 %vm614_vm3, %v701_v22 }
 0x38d   : > { %v3049_v28 = vpack.c.bf16 %v3194_v23, %v3193_v26  ;;  %2737 = vmatmul.mubr.msk.f32.gmra.mrb[14].mxu1 %vm614_vm3, %v702_v27 }
 0x38e   : > { %v843_v29 = vpop.permute.xlu1 %842  ;;  %2755 = vmatprep.mubr.msk.f32.mxu1 %vm460_vm1, %v833_v53  ;;  %v1263_v32 = vpop.permute.xlu0 %1262 }
 0x38f   : > { %3051 = vmatprep.subr.msk.bf16.mxu0 %vm3547_vm2, %v3049_v28 }
 0x390   : > { %3054 = vmatpush3.bf16.xpose.msk.msra.mxu0 %vm3547_vm2, %v3049_v28 }
 0x391   : > { %2756 = vmatmul.mubr.msk.f32.vlgmr.msra.gmra.mrb[16].mxu1 %vm460_vm1, %v835_v49 }
 0x392   : > { %v847_v57 = vpop.permute.xlu1 %846  ;;  %2758 = vmatprep.mubr.msk.f32.mxu1 %vm460_vm1, %v837_v16 }
 0x395   : > { %2759 = vmatmul.mubr.msk.f32.gmra.mrb[18].mxu1 %vm460_vm1, %v839_v10 }
 0x396   : > { %v1253_v24 = vpop.permute.xlu1 %1252  ;;  %2761 = vmatprep.mubr.msk.f32.mxu1 %vm460_vm1, %v841_v59 }
 0x397   : > { %2812 = vmatmul.mubr.msk.f32.vlgmr.msra.gmra.mrb[24].mxu0 %vm460_vm1, %v1253_v24 }
 0x398   : > { %2814 = vmatprep.mubr.msk.f32.mxu0 %vm460_vm1, %v1255_v6 }
 0x399   : > { %2762 = vmatmul.mubr.msk.f32.gmra.mrb[20].mxu1 %vm460_vm1, %v843_v29 }
 0x39a   : > { %v1257_v33 = vpop.permute.xlu1 %1256  ;;  %2764 = vmatprep.mubr.msk.f32.mxu1 %vm460_vm1, %v845_v11 }
 0x39b   : > { %2815 = vmatmul.mubr.msk.f32.gmra.mrb[26].mxu0 %vm460_vm1, %v1257_v33 }
 0x39c   : > { %2817 = vmatprep.mubr.msk.f32.mxu0 %vm460_vm1, %v1259_v30 }
 0x39d   : > { %2765 = vmatmul.mubr.msk.f32.gmra.mrb[22].mxu1 %vm460_vm1, %v847_v57 }
 0x39e   : > { %v1261_v34 = vpop.permute.xlu1 %1260 }
 0x39f   : > { %2818 = vmatmul.mubr.msk.f32.gmra.mrb[28].mxu0 %vm460_vm1, %v1261_v34 }
 0x3a0   : > { %2820 = vmatprep.mubr.msk.f32.mxu0 %vm460_vm1, %v1263_v32 }
 0x3a2   : > { %v1265_v35 = vpop.permute.xlu1 %1264 }
 0x3a3   : > { %2821 = vmatmul.mubr.msk.f32.gmra.mrb[30].mxu0 %vm460_vm1, %v1265_v35 }
 0x3f2   : > { %v3791_v36 = vpop.f32.mrb[8].mxu1 }
 0x3f3   : > { %v3793_v45 = vpop.f32.mrb[9].mxu1 }
 0x427   : > { %v3795_v46 = vpop.f32.mrb[10].mxu1 }
 0x428   : > { %v3797_v47 = vpop.f32.mrb[11].mxu1 }
 0x42b   : > { %v3799_v50 = vpop.f32.mrb[12].mxu1 }
 0x42c   : > { %v3801_v51 = vpop.f32.mrb[13].mxu1 }
 0x460   : > { %v3803_v54 = vpop.f32.mrb[14].mxu1 }
 0x461   : > { %v3805_v55 = vpop.f32.mrb[15].mxu1 }
 0x464   : > { %v3807_v58 = vpop.f32.mrb[16].mxu1 }
 0x465   : > { %v3809_v48 = vpop.f32.mrb[17].mxu1  ;;  %v1004_v21 = vsel %vm614_vm3, %v3807_v58, -inf }
 0x466   : > { %v1001_v22 = vsel %vm614_vm3, %v3809_v48, -inf }
 0x468   : > { %v3811_v52 = vpop.f32.mrb[18].mxu1 }
 0x469   : > { %v3813_v53 = vpop.f32.mrb[19].mxu1  ;;  %v1010_v23 = vsel %vm614_vm3, %v3811_v52, -inf }
 0x46a   : > { %v2813_v62 = vpop.f32.mrb[24].mxu0  ;;  %v1007_v26 = vsel %vm614_vm3, %v3813_v53, -inf }
 0x46b   : > { %v1380_v63 = vpop.f32.mrb[25].mxu0  ;;  %v1422_v0 = vsel %vm614_vm3, %v2813_v62, -inf }
 0x46c   : > { %1423 = vmax.xlane.f32.xlu1 %v1422_v0  ;;  %v3816_v2 = vpop.f32.mrb[20].mxu1  ;;  %v1419_v3 = vsel %vm614_vm3, %v1380_v63, -inf }
 0x46d   : > { %1420 = vmax.xlane.f32.xlu0 %v1419_v3  ;;  %v3819_v5 = vpop.f32.mrb[21].mxu1  ;;  %v1016_v29 = vsel %vm614_vm3, %v3816_v2, -inf }
 0x46e   : > { %v3821_v56 = vpop.f32.mrb[26].mxu0  ;;  %v1013_v27 = vsel %vm614_vm3, %v3819_v5, -inf }
 0x46f   : > { %v3823_v7 = vpop.f32.mrb[27].mxu0  ;;  %v1428_v60 = vsel %vm614_vm3, %v3821_v56, -inf }
 0x470   : > { %1429 = vmax.xlane.f32.xlu1 %v1428_v60  ;;  %v3827_v9 = vpop.f32.mrb[22].mxu1  ;;  %v1425_v10 = vsel %vm614_vm3, %v3823_v7, -inf }
 0x471   : > { %1426 = vmax.xlane.f32.xlu0 %v1425_v10  ;;  %v3831_v59 = vpop.f32.mrb[23].mxu1  ;;  %v1022_v57 = vsel %vm614_vm3, %v3827_v9, -inf }
 0x472   : > { %v3833_v11 = vpop.f32.mrb[28].mxu0  ;;  %v1019_v28 = vsel %vm614_vm3, %v3831_v59, -inf }
 0x473   : > { %v3835_v14 = vpop.f32.mrb[29].mxu0  ;;  %v1434_v61 = vsel %vm614_vm3, %v3833_v11, -inf }
 0x474   : > { %1435 = vmax.xlane.f32.xlu1 %v1434_v61  ;;  %v1431_v15 = vsel %vm614_vm3, %v3835_v14, -inf }
 0x475   : > { %1432 = vmax.xlane.f32.xlu0 %v1431_v15 }
 0x476   : > { %v3841_v49 = vpop.f32.mrb[30].mxu0 }
 0x477   : > { %v3843_v16 = vpop.f32.mrb[31].mxu0  ;;  %v1440_v18 = vsel %vm614_vm3, %v3841_v49, -inf }
 0x478   : > { %1441 = vmax.xlane.f32.xlu1 %v1440_v18  ;;  %v1437_v20 = vsel %vm614_vm3, %v3843_v16, -inf }
 0x479   : > { %1438 = vmax.xlane.f32.xlu0 %v1437_v20 }
 0x489   : > { %3196 = vrot.lane.b32.xlu1 %v3629_v1, %s3472_s27 }
 0x48f   : > { %3201 = vrot.lane.b32.xlu0 %v3631_v4, %s3472_s27 }
 0x4ad   : > { %1005 = vmax.xlane.f32.xlu1 %v1004_v21 }
 0x4ae   : > { %1002 = vmax.xlane.f32.xlu0 %v1001_v22 }
 0x4b2   : > { %1011 = vmax.xlane.f32.xlu0 %v1010_v23 }
 0x4b6   : > { %1008 = vmax.xlane.f32.xlu0 %v1007_v26 }
 0x4ba   : > { %1014 = vmax.xlane.f32.xlu0 %v1013_v27 }
 0x4be   : > { %3206 = vrot.lane.b32.xlu1 %v3633_v8, %s3472_s27  ;;  %1020 = vmax.xlane.f32.xlu0 %v1019_v28 }
 0x4d4   : > { %3211 = vrot.lane.b32.xlu0 %v3637_v12, %s3472_s27 }
 0x4e2   : > { %1017 = vmax.xlane.f32.xlu1 %v1016_v29 }
 0x4e6   : > { %1023 = vmax.xlane.f32.xlu1 %v1022_v57 }
 0x4f9   : > { %v1424_v6 = vpop.xlane.xlu1 %1423 }
 0x4fa   : > { %v1444_v24 = vsub.f32 %v2813_v62, %v1424_v6  ;;  %v1421_v30 = vpop.xlane.xlu0 %1420 }
 0x4fb   : > { %v1443_v33 = vsub.f32 %v1380_v63, %v1421_v30 }
 0x4fc   : > { %v1453_v34 = vmul.f32 1.442695, %v1444_v24 }
 0x4fd   : > { %v1451_v32 = vmul.f32 1.442695, %v1443_v33  ;;  %v1430_v35 = vpop.xlane.xlu1 %1429 }
 0x4fe   : > { %3367 = vpow2.f32 %v1453_v34  ;;  %v1427_v0 = vpop.xlane.xlu0 %1426  ;;  %v1446_v24 = vsub.f32 %v3821_v56, %v1430_v35 }
 0x4ff   : > { %3369 = vpow2.f32 %v1451_v32  ;;  %v1445_v33 = vsub.f32 %v3823_v7, %v1427_v0 }
 0x500   : > { %v1457_v30 = vmul.f32 1.442695, %v1446_v24 }
 0x501   : > { %v1436_v3 = vpop.xlane.xlu1 %1435  ;;  %v1455_v34 = vmul.f32 1.442695, %v1445_v33 }
 0x502   : > { %v1448_v60 = vsub.f32 %v3833_v11, %v1436_v3  ;;  %v1433_v10 = vpop.xlane.xlu0 %1432  ;;  %3371 = vpow2.f32 %v1457_v30 }
 0x503   : > { %3373 = vpow2.f32 %v1455_v34  ;;  %v1447_v32 = vsub.f32 %v3835_v14, %v1433_v10 }
 0x505   : > { %v3874_v61 = vpop.xlane.xlu1 %1441 }
 0x506   : > { %v1450_v15 = vsub.f32 %v3841_v49, %v3874_v61  ;;  %v3878_v18 = vpop.xlane.xlu0 %1438 }
 0x507   : > { %v1449_v62 = vsub.f32 %v3843_v16, %v3878_v18 }
 0x508   : > { %v3882_v63 = vpop.eup %3367 }
 0x509   : > { %v3884_v20 = vpop.eup %3369  ;;  %v3197_v21 = vpop.permute.xlu1 %3196  ;;  %v1470_v22 = vsel %vm614_vm3, %v3882_v63, 0.0 }
 0x50a   : > { %v3199_v11 = vunpack.i.h.bf16 %v3197_v21  ;;  %v3198_v23 = vunpack.i.l.bf16 %v3197_v21  ;;  %v3202_v26 = vpop.permute.xlu0 %3201  ;;  %1471 = vadd.xlane.f32.xlu0 %v1470_v22  ;;  %v1467_v27 = vsel %vm614_vm3, %v3884_v20, 0.0 }
 0x50b   : > { %v3204_v28 = vunpack.i.h.bf16 %v3202_v26  ;;  %v3203_v29 = vunpack.i.l.bf16 %v3202_v26  ;;  %1468 = vadd.xlane.f32.xlu1 %v1467_v27  ;;  %v1459_v27 = vmul.f32 1.442695, %v1447_v32 }
 0x50c   : > { %v3015_v57 = vpack.c.bf16 %v3199_v11, %v3198_v23  ;;  %v3901_v21 = vpop.eup %3371 }
 0x50d   : > { %v3019_v6 = vpack.c.bf16 %v3204_v28, %v3203_v29  ;;  %v1476_v35 = vsel %vm614_vm3, %v3901_v21, 0.0 }
 0x50e   : > { %3016 = vmatprep.subr.bf16.mxu1 %v3015_v57 }
 0x50f   : > { %3018 = vmatpush3.bf16.msra.mxu1 %v3015_v57 }
 0x510   : > { %3020 = vmatprep.subr.bf16.mxu1 %v3019_v6 }
 0x513   : > { %3022 = vmatpush3.bf16.msra.mxu1 %v3019_v6  ;;  %v3908_v6 = vpop.eup %3373 }
 0x514   : > { %v1473_v34 = vsel %vm614_vm3, %v3908_v6, 0.0 }
 0x51c   : > { %3216 = vrot.lane.b32.xlu1 %v3629_v1, %s3473_s28 }
 0x520   : > { %3226 = vrot.lane.b32.xlu1 %v3633_v8, %s3473_s28  ;;  %3221 = vrot.lane.b32.xlu0 %v3631_v4, %s3473_s28 }
 0x524   : > { %3231 = vrot.lane.b32.xlu1 %v3637_v12, %s3473_s28 }
 0x53a   : > { %v1006_v3 = vpop.xlane.xlu1 %1005 }
 0x53b   : > { %v1026_v22 = vsub.f32 %v3807_v58, %v1006_v3  ;;  %v1003_v11 = vpop.xlane.xlu0 %1002  ;;  %v1461_v58 = vmul.f32 1.442695, %v1448_v60 }
 0x53c   : > { %v1025_v23 = vsub.f32 %v3809_v48, %v1003_v11 }
 0x53d   : > { %v1035_v26 = vmul.f32 1.442695, %v1026_v22 }
 0x53e   : > { %v1033_v28 = vmul.f32 1.442695, %v1025_v23  ;;  %v3207_v56 = vpop.permute.xlu1 %3206 }
 0x53f   : > { %3375 = vpow2.f32 %v1035_v26  ;;  %v3209_v7 = vunpack.i.h.bf16 %v3207_v56  ;;  %v3208_v0 = vunpack.i.l.bf16 %v3207_v56  ;;  %v1012_v29 = vpop.xlane.xlu0 %1011  ;;  %1477 = vadd.xlane.f32.xlu0 %v1476_v35 }
 0x540   : > { %3377 = vpow2.f32 %v1033_v28  ;;  %v1028_v14 = vsub.f32 %v3811_v52, %v1012_v29 }
 0x541   : > { %v3023_v10 = vpack.c.bf16 %v3209_v7, %v3208_v0  ;;  %3379 = vpow2.f32 %v1459_v27 }
 0x542   : > { %v1039_v57 = vmul.f32 1.442695, %v1028_v14 }
 0x543   : > { %3024 = vmatprep.subr.bf16.mxu1 %v3023_v10  ;;  %v1009_v48 = vpop.xlane.xlu0 %1008 }
 0x544   : > { %3381 = vpow2.f32 %v1039_v57  ;;  %v1027_v24 = vsub.f32 %v3813_v53, %v1009_v48  ;;  %3026 = vmatpush3.bf16.msra.mxu1 %v3023_v10 }
 0x545   : > { %3383 = vpow2.f32 %v1461_v58 }
 0x546   : > { %v1037_v30 = vmul.f32 1.442695, %v1027_v24 }
 0x547   : > { %v1015_v33 = vpop.xlane.xlu0 %1014 }
 0x548   : > { %3385 = vpow2.f32 %v1037_v30  ;;  %v1029_v52 = vsub.f32 %v3819_v5, %v1015_v33  ;;  %1474 = vadd.xlane.f32.xlu1 %v1473_v34  ;;  %v1463_v30 = vmul.f32 1.442695, %v1449_v62 }
 0x549   : > { %v3914_v60 = vpop.eup %3375 }
 0x54a   : > { %v3916_v32 = vpop.eup %3377  ;;  %v1041_v3 = vmul.f32 1.442695, %v1029_v52  ;;  %v1052_v22 = vsel %vm614_vm3, %v3914_v60, 0.0 }
 0x54b   : > { %v1021_v53 = vpop.xlane.xlu0 %1020  ;;  %v1049_v11 = vsel %vm614_vm3, %v3916_v32, 0.0  ;;  %v3922_v23 = vpop.eup %3379 }
 0x54c   : > { %3387 = vpow2.f32 %v1041_v3  ;;  %1053 = vadd.xlane.f32.xlu1 %v1052_v22  ;;  %1050 = vadd.xlane.f32.xlu0 %v1049_v11  ;;  %v1479_v27 = vsel %vm614_vm3, %v3922_v23, 0.0  ;;  %v1031_v33 = vsub.f32 %v3831_v59, %v1021_v53  ;;  %v1465_v22 = vmul.f32 1.442695, %v1450_v15 }
 0x54e   : > { %v3924_v26 = vpop.eup %3381  ;;  %v1045_v11 = vmul.f32 1.442695, %v1031_v33 }
 0x54f   : > { %v3212_v5 = vpop.permute.xlu0 %3211  ;;  %v1058_v28 = vsel %vm614_vm3, %v3924_v26, 0.0  ;;  %v3930_v56 = vpop.eup %3383 }
 0x550   : > { %v3214_v35 = vunpack.i.h.bf16 %v3212_v5  ;;  %v3213_v7 = vunpack.i.l.bf16 %v3212_v5  ;;  %1480 = vadd.xlane.f32.xlu1 %v1479_v27  ;;  %1059 = vadd.xlane.f32.xlu0 %v1058_v28  ;;  %v1482_v14 = vsel %vm614_vm3, %v3930_v56, 0.0 }
 0x552   : > { %v3932_v0 = vpop.eup %3385  ;;  %v3027_v29 = vpack.c.bf16 %v3214_v35, %v3213_v7 }
 0x553   : > { %v1055_v10 = vsel %vm614_vm3, %v3932_v0, 0.0 }
 0x554   : > { %1483 = vadd.xlane.f32.xlu1 %v1482_v14  ;;  %1056 = vadd.xlane.f32.xlu0 %v1055_v10 }
 0x555   : > { %3028 = vmatprep.subr.bf16.mxu1 %v3027_v29 }
 0x556   : > { %v3938_v58 = vpop.eup %3387  ;;  %3030 = vmatpush3.bf16.msra.mxu1 %v3027_v29 }
 0x557   : > { %v1061_v57 = vsel %vm614_vm3, %v3938_v58, 0.0 }
 0x558   : > { %1062 = vadd.xlane.f32.xlu0 %v1061_v57 }
 0x56f   : > { %v1018_v48 = vpop.xlane.xlu1 %1017 }
 0x570   : > { %v1030_v24 = vsub.f32 %v3816_v2, %v1018_v48 }
 0x572   : > { %v1043_v34 = vmul.f32 1.442695, %v1030_v24 }
 0x573   : > { %v1024_v52 = vpop.xlane.xlu1 %1023 }
 0x574   : > { %3389 = vpow2.f32 %v1043_v34  ;;  %v1032_v3 = vsub.f32 %v3827_v9, %v1024_v52 }
 0x575   : > { %3391 = vpow2.f32 %v1463_v30 }
 0x576   : > { %v1047_v5 = vmul.f32 1.442695, %v1032_v3 }
 0x578   : > { %3393 = vpow2.f32 %v1047_v5 }
 0x579   : > { %3395 = vpow2.f32 %v1465_v22 }
 0x57a   : > { %3397 = vpow2.f32 %v1045_v11 }
 0x57e   : > { %v3951_v2 = vpop.eup %3389 }
 0x57f   : > { %v1064_v59 = vsel %vm614_vm3, %v3951_v2, 0.0  ;;  %v3955_v16 = vpop.eup %3391 }
 0x580   : > { %1065 = vadd.xlane.f32.xlu1 %v1064_v59  ;;  %v1485_v49 = vsel %vm614_vm3, %v3955_v16, 0.0 }
 0x582   : > { %v3957_v18 = vpop.eup %3393 }
 0x583   : > { %v3959_v9 = vpop.eup %3395  ;;  %v1070_v61 = vsel %vm614_vm3, %v3957_v18, 0.0 }
 0x584   : > { %v3965_v15 = vpop.eup %3397  ;;  %1486 = vadd.xlane.f32.xlu1 %v1485_v49  ;;  %1071 = vadd.xlane.f32.xlu0 %v1070_v61  ;;  %v1488_v62 = vsel %vm614_vm3, %v3959_v9, 0.0 }
 0x585   : > { %v1067_v53 = vsel %vm614_vm3, %v3965_v15, 0.0 }
 0x588   : > { %1489 = vadd.xlane.f32.xlu1 %v1488_v62  ;;  %1068 = vadd.xlane.f32.xlu0 %v1067_v53 }
 0x598   : > { %v3971_v27 = vpop.xlane.xlu1 %1468 }
 0x599   : > { %3241 = vrot.lane.b32.xlu1 %v3557_v25, %s3474_s29 }
 0x59c   : > { %v3217_v28 = vpop.permute.xlu1 %3216 }
 0x59d   : > { %v3219_v35 = vunpack.i.h.bf16 %v3217_v28  ;;  %v3218_v7 = vunpack.i.l.bf16 %v3217_v28  ;;  %3251 = vrot.lane.b32.xlu1 %v3569_v37, %s3474_s29 }
 0x59e   : > { %3236 = vrot.lane.b32.xlu0 %v3551_v19, %s3474_s29  ;;  %v1472_v19 = vpop.xlane.xlu0 %1471 }
 0x59f   : > { %v3055_v29 = vpack.c.bf16 %v3219_v35, %v3218_v7 }
 0x5a0   : > { %v3227_v25 = vpop.permute.xlu1 %3226 }
 0x5a1   : > { %1662 = vrot.lane.b32.xlu1 %v3575_v38, %s3474_s29  ;;  %3056 = vmatprep.subr.bf16.mxu1 %v3055_v29  ;;  %v3229_v33 = vunpack.i.h.bf16 %v3227_v25  ;;  %v3228_v34 = vunpack.i.l.bf16 %v3227_v25 }
 0x5a2   : > { %3246 = vrot.lane.b32.xlu0 %v3563_v31, %s3474_s29  ;;  %v3222_v31 = vpop.permute.xlu0 %3221 }
 0x5a3   : > { %v3224_v10 = vunpack.i.h.bf16 %v3222_v31  ;;  %v3223_v57 = vunpack.i.l.bf16 %v3222_v31  ;;  %v3063_v22 = vpack.c.bf16 %v3229_v33, %v3228_v34 }
 0x5a4   : > { %v3232_v37 = vpop.permute.xlu1 %3231 }
 0x5a5   : > { %1666 = vrot.lane.b32.xlu1 %v3583_v40, %s3474_s29  ;;  %v3059_v30 = vpack.c.bf16 %v3224_v10, %v3223_v57  ;;  %v3234_v11 = vunpack.i.h.bf16 %v3232_v37  ;;  %v3233_v5 = vunpack.i.l.bf16 %v3232_v37 }
 0x5a6   : > { %1660 = vrot.lane.b32.xlu0 %v3541_v13, %s3474_s29 }
 0x5a7   : > { %v3067_v49 = vpack.c.bf16 %v3234_v11, %v3233_v5 }
 0x5a9   : > { %1670 = vrot.lane.b32.xlu1 %v3591_v42, %s3474_s29 }
 0x5aa   : > { %1664 = vrot.lane.b32.xlu0 %v3577_v39, %s3474_s29 }
 0x5ad   : > { %1674 = vrot.lane.b32.xlu1 %v3599_v44, %s3474_s29 }
 0x5ae   : > { %1668 = vrot.lane.b32.xlu0 %v3585_v41, %s3474_s29 }
 0x5b2   : > { %1672 = vrot.lane.b32.xlu0 %v3593_v43, %s3474_s29 }
 0x5cc   : > { %v3997_v13 = vpop.xlane.xlu0 %1477 }
 0x5d5   : > { %v1475_v38 = vpop.xlane.xlu1 %1474 }
 0x5d9   : > { %v1054_v40 = vpop.xlane.xlu1 %1053  ;;  %v1051_v42 = vpop.xlane.xlu0 %1050 }
 0x5da   : > { %3399 = vrcp.f32 %v1054_v40 }
 0x5db   : > { %3401 = vrcp.f32 %v1051_v42 }
 0x5dd   : > { %v1060_v39 = vpop.xlane.xlu0 %1059  ;;  %v1481_v62 = vpop.xlane.xlu1 %1480 }
 0x5de   : > { %3403 = vrcp.f32 %v1060_v39 }
 0x5e1   : > { %v1057_v14 = vpop.xlane.xlu0 %1056  ;;  %v1484_v53 = vpop.xlane.xlu1 %1483 }
 0x5e2   : > { %3405 = vrcp.f32 %v1057_v14 }
 0x5e4   : > { %v3400_v44 = vpop.eup %3399 }
 0x5e5   : > { %v3402_v41 = vpop.eup %3401  ;;  %v1082_v43 = vmul.f32 %v3400_v44, %v3914_v60  ;;  %v1063_v48 = vpop.xlane.xlu0 %1062 }
 0x5e6   : > { %3407 = vrcp.f32 %v1063_v48  ;;  %v1081_v24 = vmul.f32 %v3402_v41, %v3916_v32 }
 0x5e8   : > { %2783 = vmatprep.mubr.msk.f32.mxu1 %vm614_vm3, %v1081_v24  ;;  %v3404_v52 = vpop.eup %3403 }
 0x5e9   : > { %2784 = vmatmul.mubr.msk.f32.vlgmr.msra.gmra.mrb[24].mxu1 %vm614_vm3, %v1082_v43  ;;  %v1084_v32 = vmul.f32 %v3404_v52, %v3924_v26 }
 0x5ea   : > { %3058 = vmatpush3.bf16.msra.mxu1 %v3055_v29 }
 0x5eb   : > { %3060 = vmatprep.subr.bf16.mxu1 %v3059_v30 }
 0x5ec   : > { %v3406_v3 = vpop.eup %3405 }
 0x5ed   : > { %v1083_v60 = vmul.f32 %v3406_v3, %v3932_v0 }
 0x5ee   : > { %3062 = vmatpush3.bf16.msra.mxu1 %v3059_v30 }
 0x5ef   : > { %3064 = vmatprep.subr.bf16.mxu1 %v3063_v22  ;;  %2786 = vmatprep.mubr.msk.f32.mxu1 %vm614_vm3, %v1083_v60 }
 0x5f0   : > { %v3408_v59 = vpop.eup %3407  ;;  %2787 = vmatmul.mubr.msk.f32.gmra.mrb[26].mxu1 %vm614_vm3, %v1084_v32 }
 0x5f1   : > { %v1085_v61 = vmul.f32 %v3408_v59, %v3938_v58 }
 0x5f2   : > { %3066 = vmatpush3.bf16.msra.mxu1 %v3063_v22 }
 0x5f3   : > { %3068 = vmatprep.subr.bf16.mxu1 %v3067_v49  ;;  %2789 = vmatprep.mubr.msk.f32.mxu1 %vm614_vm3, %v1085_v61 }
 0x5f6   : > { %3070 = vmatpush3.bf16.msra.mxu1 %v3067_v49 }
 0x60d   : > { %v1066_v28 = vpop.xlane.xlu1 %1065 }
 0x60e   : > { %3409 = vrcp.f32 %v1066_v28 }
 0x60f   : > { %3411 = vrcp.f32 %v3971_v27 }
 0x611   : > { %v1072_v0 = vpop.xlane.xlu0 %1071  ;;  %v1487_v35 = vpop.xlane.xlu1 %1486 }
 0x612   : > { %3413 = vrcp.f32 %v1072_v0 }
 0x615   : > { %v1069_v26 = vpop.xlane.xlu0 %1068  ;;  %v1490_v37 = vpop.xlane.xlu1 %1489 }
 0x616   : > { %3415 = vrcp.f32 %v1069_v26 }
 0x617   : > { %3417 = vrcp.f32 %v1472_v19 }
 0x618   : > { %v3410_v7 = vpop.eup %3409  ;;  %3419 = vrcp.f32 %v1475_v38 }
 0x619   : > { %v3237_v29 = vpop.permute.xlu0 %3236  ;;  %v1086_v58 = vmul.f32 %v3410_v7, %v3951_v2  ;;  %3421 = vrcp.f32 %v3997_v13  ;;  %v3412_v27 = vpop.eup %3411 }
 0x61a   : > { %v3239_v25 = vunpack.i.h.bf16 %v3237_v29  ;;  %v3238_v31 = vunpack.i.l.bf16 %v3237_v29  ;;  %3423 = vrcp.f32 %v1481_v62  ;;  %v3242_v14 = vpop.permute.xlu1 %3241  ;;  %v1499_v44 = vmul.f32 %v3412_v27, %v3884_v20 }
 0x61b   : > { %2790 = vmatmul.mubr.msk.f32.gmra.mrb[28].mxu1 %vm614_vm3, %v1086_v58  ;;  %3425 = vrcp.f32 %v1484_v53  ;;  %v3244_v41 = vunpack.i.h.bf16 %v3242_v14  ;;  %v3243_v10 = vunpack.i.l.bf16 %v3242_v14 }
 0x61c   : > { %v3071_v40 = vpack.c.bf16 %v3239_v25, %v3238_v31  ;;  %v3414_v42 = vpop.eup %3413  ;;  %3427 = vrcp.f32 %v1487_v35 }
 0x61d   : > { %v1088_v19 = vmul.f32 %v3414_v42, %v3957_v18  ;;  %3429 = vrcp.f32 %v1490_v37  ;;  %v3077_v18 = vpack.c.bf16 %v3244_v41, %v3243_v10  ;;  %v3247_v24 = vpop.permute.xlu0 %3246 }
 0x61e   : > { %3073 = vmatprep.subr.msk.bf16.mxu1 %vm3547_vm2, %v3071_v40  ;;  %v3248_v34 = vunpack.i.l.bf16 %v3247_v24  ;;  %v3252_v5 = vpop.permute.xlu1 %3251 }
 0x61f   : > { %v3253_v60 = vunpack.i.l.bf16 %v3252_v5 }
 0x620   : > { %v3416_v39 = vpop.eup %3415 }
 0x621   : > { %v1087_v2 = vmul.f32 %v3416_v39, %v3965_v15  ;;  %v3418_v38 = vpop.eup %3417 }
 0x622   : > { %v3420_v13 = vpop.eup %3419  ;;  %v1500_v57 = vmul.f32 %v3418_v38, %v3882_v63  ;;  %v1663_v32 = vpop.permute.xlu1 %1662 }
 0x623   : > { %2792 = vmatprep.mubr.msk.f32.mxu1 %vm614_vm3, %v1087_v2  ;;  %v3422_v43 = vpop.eup %3421  ;;  %v1501_v15 = vmul.f32 %v3420_v13, %v3908_v6  ;;  %v3249_v6 = vunpack.i.h.bf16 %v3247_v24 }
 0x624   : > { %2793 = vmatmul.mubr.msk.f32.gmra.mrb[30].mxu1 %vm614_vm3, %v1088_v19  ;;  %v3424_v48 = vpop.eup %3423  ;;  %v1502_v20 = vmul.f32 %v3422_v43, %v3901_v21 }
 0x625   : > { %2839 = vmatprep.mubr.msk.f32.mxu1 %vm614_vm3, %v1499_v44  ;;  %v3426_v30 = vpop.eup %3425  ;;  %v1503_v63 = vmul.f32 %v3424_v48, %v3922_v23  ;;  %v3083_v11 = vpack.c.bf16 %v3249_v6, %v3248_v34  ;;  %v3254_v23 = vunpack.i.h.bf16 %v3252_v5 }
 0x626   : > { %v3428_v33 = vpop.eup %3427  ;;  %v1504_v52 = vmul.f32 %v3426_v30, %v3930_v56  ;;  %v1661_v56 = vpop.permute.xlu0 %1660 }
 0x627   : > { %v3430_v3 = vpop.eup %3429  ;;  %v1505_v22 = vmul.f32 %v3428_v33, %v3955_v16  ;;  %v3089_v16 = vpack.c.bf16 %v3254_v23, %v3253_v60 }
 0x628   : > { %2840 = vmatmul.mubr.msk.f32.vlgmr.msra.gmra.mrb[32].mxu1 %vm614_vm3, %v1500_v57  ;;  %v1506_v21 = vmul.f32 %v3430_v3, %v3959_v9  ;;  %v1667_v9 = vpop.permute.xlu1 %1666 }
 0x629   : > { %3076 = vmatpush3.bf16.xpose.msk.msra.mxu1 %vm3547_vm2, %v3071_v40  ;;  %2842 = vmatprep.mubr.msk.f32.mxu1 %vm614_vm3, %v1501_v15 }
 0x62a   : > { %3079 = vmatprep.subr.msk.bf16.mxu1 %vm3547_vm2, %v3077_v18  ;;  %v1665_v59 = vpop.permute.xlu0 %1664 }
 0x62c   : > { %2843 = vmatmul.mubr.msk.f32.gmra.mrb[34].mxu1 %vm614_vm3, %v1502_v20  ;;  %v1671_v61 = vpop.permute.xlu1 %1670 }
 0x62d   : > { %2845 = vmatprep.mubr.msk.f32.mxu1 %vm614_vm3, %v1503_v63 }
 0x62e   : > { %v1669_v49 = vpop.permute.xlu0 %1668 }
 0x630   : > { %2846 = vmatmul.mubr.msk.f32.gmra.mrb[36].mxu1 %vm614_vm3, %v1504_v52  ;;  %v1675_v53 = vpop.permute.xlu1 %1674 }
 0x631   : > { %3082 = vmatpush3.bf16.xpose.msk.msra.mxu1 %vm3547_vm2, %v3077_v18  ;;  %2848 = vmatprep.mubr.msk.f32.mxu1 %vm614_vm3, %v1505_v22 }
 0x632   : > { %3085 = vmatprep.subr.msk.bf16.mxu1 %vm3547_vm2, %v3083_v11  ;;  %v1673_v62 = vpop.permute.xlu0 %1672 }
 0x634   : > { %2849 = vmatmul.mubr.msk.f32.gmra.mrb[38].mxu1 %vm614_vm3, %v1506_v21 }
 0x635   : > { %2867 = vmatprep.mubr.msk.f32.mxu1 %vm460_vm1, %v1661_v56 }
 0x639   : > { %3088 = vmatpush3.bf16.xpose.msk.msra.mxu1 %vm3547_vm2, %v3083_v11 }
 0x63a   : > { %3091 = vmatprep.subr.msk.bf16.mxu1 %vm3547_vm2, %v3089_v16 }
 0x641   : > { %3094 = vmatpush3.bf16.xpose.msk.msra.mxu1 %vm3547_vm2, %v3089_v16 }
 0x648   : > { %2868 = vmatmul.mubr.msk.f32.vlgmr.msra.gmra.mrb[40].mxu1 %vm460_vm1, %v1663_v32 }
 0x649   : > { %2870 = vmatprep.mubr.msk.f32.mxu1 %vm460_vm1, %v1665_v59 }
 0x64c   : > { %2871 = vmatmul.mubr.msk.f32.gmra.mrb[42].mxu1 %vm460_vm1, %v1667_v9 }
 0x64d   : > { %2873 = vmatprep.mubr.msk.f32.mxu1 %vm460_vm1, %v1669_v49 }
 0x650   : > { %2874 = vmatmul.mubr.msk.f32.gmra.mrb[44].mxu1 %vm460_vm1, %v1671_v61 }
 0x651   : > { %2876 = vmatprep.mubr.msk.f32.mxu1 %vm460_vm1, %v1673_v62 }
 0x654   : > { %2877 = vmatmul.mubr.msk.f32.gmra.mrb[46].mxu1 %vm460_vm1, %v1675_v53 }
 0x6bc   : > { %v4057_v17 = vpop.f32.mrb[24].mxu1 }
 0x6bd   : > { %v4059_v28 = vpop.f32.mrb[25].mxu1 }
 0x6be   : > { %v3275_v0 = vpack.i.bf16 %v4057_v17, %v4059_v28 }
 0x6c3   : > { %v4063_v26 = vpop.f32.mrb[26].mxu1 }
 0x6c4   : > { %v4065_v35 = vpop.f32.mrb[27].mxu1 }
 0x6c5   : > { %v3285_v7 = vpack.i.bf16 %v4063_v26, %v4065_v35 }
 0x6ee   : > { %v4069_v29 = vpop.f32.mrb[28].mxu1 }
 0x6ef   : > { %v4071_v58 = vpop.f32.mrb[29].mxu1 }
 0x6f0   : > { %v3300_v25 = vpack.i.bf16 %v4069_v29, %v4071_v58 }
 0x6f7   : > { %v4075_v31 = vpop.f32.mrb[30].mxu1 }
 0x6f8   : > { %v4077_v37 = vpop.f32.mrb[31].mxu1 }
 0x6f9   : > { %v3315_v40 = vpack.i.bf16 %v4075_v31, %v4077_v37 }
 0x6fb   : > { %v4081_v27 = vpop.f32.mrb[32].mxu1 }
 0x6fc   : > { %v4083_v42 = vpop.f32.mrb[33].mxu1 }
 0x6fd   : > { %v3280_v39 = vpack.i.bf16 %v4081_v27, %v4083_v42 }
 0x6ff   : > { %v4087_v14 = vpop.f32.mrb[34].mxu1 }
 0x700   : > { %v4089_v2 = vpop.f32.mrb[35].mxu1 }
 0x701   : > { %v3290_v19 = vpack.i.bf16 %v4087_v14, %v4089_v2 }
 0x703   : > { %v4093_v38 = vpop.f32.mrb[36].mxu1 }
 0x704   : > { %v4095_v44 = vpop.f32.mrb[37].mxu1 }
 0x705   : > { %v3305_v13 = vpack.i.bf16 %v4093_v38, %v4095_v44 }
 0x707   : > { %v4099_v41 = vpop.f32.mrb[38].mxu1 }
 0x708   : > { %v4101_v10 = vpop.f32.mrb[39].mxu1 }
 0x709   : > { %v3325_v57 = vpack.i.bf16 %v4099_v41, %v4101_v10 }
 0x71b   : > { %v2869_v43 = vpop.f32.mrb[40].mxu1 }
 0x71c   : > { %v1790_v15 = vpop.f32.mrb[41].mxu1  ;;  %v1832_v48 = vsel %vm614_vm3, %v2869_v43, -inf }
 0x71d   : > { %1833 = vmax.xlane.f32.xlu1 %v1832_v48  ;;  %v1829_v18 = vsel %vm614_vm3, %v1790_v15, -inf }
 0x71e   : > { %1830 = vmax.xlane.f32.xlu0 %v1829_v18 }
 0x71f   : > { %v2872_v24 = vpop.f32.mrb[42].mxu1 }
 0x720   : > { %v1800_v20 = vpop.f32.mrb[43].mxu1  ;;  %v1838_v30 = vsel %vm614_vm3, %v2872_v24, -inf }
 0x721   : > { %v1835_v34 = vsel %vm614_vm3, %v1800_v20, -inf }
 0x722   : > { %1839 = vmax.xlane.f32.xlu0 %v1838_v30 }
 0x723   : > { %v2875_v63 = vpop.f32.mrb[44].mxu1 }
 0x724   : > { %v1810_v33 = vpop.f32.mrb[45].mxu1  ;;  %v1844_v6 = vsel %vm614_vm3, %v2875_v63, -inf }
 0x725   : > { %1845 = vmax.xlane.f32.xlu1 %v1844_v6  ;;  %v1841_v11 = vsel %vm614_vm3, %v1810_v33, -inf }
 0x726   : > { %1836 = vmax.xlane.f32.xlu0 %v1835_v34 }
 0x727   : > { %v2878_v52 = vpop.f32.mrb[46].mxu1 }
 0x728   : > { %v1820_v3 = vpop.f32.mrb[47].mxu1  ;;  %v1850_v22 = vsel %vm614_vm3, %v2878_v52, -inf }
 0x729   : > { %1851 = vmax.xlane.f32.xlu1 %v1850_v22  ;;  %v1847_v5 = vsel %vm614_vm3, %v1820_v3, -inf }
 0x72a   : > { %1842 = vmax.xlane.f32.xlu0 %v1841_v11 }
 0x72e   : > { %1848 = vmax.xlane.f32.xlu0 %v1847_v5 }
 0x73a   : > { %3261 = vrot.lane.b32.xlu1 %v3631_v4, %s3474_s29 }
 0x744   : > { %3256 = vrot.lane.b32.xlu0 %v3629_v1, %s3474_s29 }
 0x7aa   : > { %v1834_v21 = vpop.xlane.xlu1 %1833 }
 0x7ab   : > { %v1854_v23 = vsub.f32 %v2869_v43, %v1834_v21  ;;  %v1831_v60 = vpop.xlane.xlu0 %1830 }
 0x7ac   : > { %v1853_v56 = vsub.f32 %v1790_v15, %v1831_v60 }
 0x7ad   : > { %v1863_v16 = vmul.f32 1.442695, %v1854_v23 }
 0x7ae   : > { %v1861_v32 = vmul.f32 1.442695, %v1853_v56 }
 0x7af   : > { %3431 = vpow2.f32 %v1863_v16  ;;  %v1840_v59 = vpop.xlane.xlu0 %1839 }
 0x7b0   : > { %3433 = vpow2.f32 %v1861_v32  ;;  %v1856_v9 = vsub.f32 %v2872_v24, %v1840_v59 }
 0x7b2   : > { %v1867_v49 = vmul.f32 1.442695, %v1856_v9  ;;  %v1846_v61 = vpop.xlane.xlu1 %1845 }
 0x7b3   : > { %v1858_v62 = vsub.f32 %v2875_v63, %v1846_v61  ;;  %v1837_v53 = vpop.xlane.xlu0 %1836 }
 0x7b4   : > { %3435 = vpow2.f32 %v1867_v49  ;;  %v1855_v48 = vsub.f32 %v1800_v20, %v1837_v53 }
 0x7b5   : > { %v1871_v4 = vmul.f32 1.442695, %v1858_v62 }
 0x7b6   : > { %v1865_v18 = vmul.f32 1.442695, %v1855_v48  ;;  %v1852_v30 = vpop.xlane.xlu1 %1851 }
 0x7b7   : > { %3437 = vpow2.f32 %v1871_v4  ;;  %v1860_v1 = vsub.f32 %v2878_v52, %v1852_v30  ;;  %v1843_v43 = vpop.xlane.xlu0 %1842 }
 0x7b8   : > { %3439 = vpow2.f32 %v1865_v18  ;;  %v1857_v15 = vsub.f32 %v1810_v33, %v1843_v43 }
 0x7b9   : > { %v4117_v6 = vpop.eup %3431  ;;  %v1875_v34 = vmul.f32 1.442695, %v1860_v1 }
 0x7ba   : > { %v3434_v22 = vpop.eup %3433  ;;  %v1869_v11 = vmul.f32 1.442695, %v1857_v15  ;;  %v1880_v24 = vsel %vm614_vm3, %v4117_v6, 0.0  ;;  %v3262_v21 = vpop.permute.xlu1 %3261 }
 0x7bb   : > { %3441 = vpow2.f32 %v1875_v34  ;;  %1881 = vadd.xlane.f32.xlu1 %v1880_v24  ;;  %v1849_v63 = vpop.xlane.xlu0 %1848  ;;  %v1877_v20 = vsel %vm614_vm3, %v3434_v22, 0.0  ;;  %v3264_v59 = vunpack.i.h.bf16 %v3262_v21  ;;  %v3263_v9 = vunpack.i.l.bf16 %v3262_v21 }
 0x7bc   : > { %3443 = vpow2.f32 %v1869_v11  ;;  %v1859_v5 = vsub.f32 %v1820_v3, %v1849_v63  ;;  %1878 = vadd.xlane.f32.xlu0 %v1877_v20 }
 0x7bd   : > { %v3099_v48 = vpack.c.bf16 %v3264_v59, %v3263_v9  ;;  %v2192_v59 = vld [vmem:[%s4290_s2 + $0x8] sm:$0xff] }
 0x7be   : > { %v4122_v52 = vpop.eup %3435  ;;  %v1873_v33 = vmul.f32 1.442695, %v1859_v5 }
 0x7bf   : > { %v3257_v23 = vpop.permute.xlu0 %3256  ;;  %v1886_v60 = vsel %vm614_vm3, %v4122_v52, 0.0 }
 0x7c0   : > { %3445 = vpow2.f32 %v1873_v33  ;;  %v3259_v56 = vunpack.i.h.bf16 %v3257_v23  ;;  %v3258_v16 = vunpack.i.l.bf16 %v3257_v23  ;;  %1887 = vadd.xlane.f32.xlu1 %v1886_v60 }
 0x7c1   : > { %v4126_v32 = vpop.eup %3437 }
 0x7c2   : > { %v3440_v49 = vpop.eup %3439  ;;  %v3095_v61 = vpack.c.bf16 %v3259_v56, %v3258_v16  ;;  %v1892_v3 = vsel %vm614_vm3, %v4126_v32, 0.0 }
 0x7c3   : > { %v1883_v62 = vsel %vm614_vm3, %v3440_v49, 0.0 }
 0x7c4   : > { %1893 = vadd.xlane.f32.xlu1 %v1892_v3  ;;  %1884 = vadd.xlane.f32.xlu0 %v1883_v62  ;;  %v2195_v3 = vld [vmem:[%s4290_s2 + $0x20] sm:$0xff]  ;;  %v2196_v62 = vld [vmem:[%s4290_s2 + $0x28] sm:$0xff] }
 0x7c5   : > { %v4131_v53 = vpop.eup %3441  ;;  %3096 = vmatprep.subr.bf16.mxu0 %v3095_v61 }
 0x7c6   : > { %v3444_v4 = vpop.eup %3443  ;;  %3098 = vmatpush3.bf16.msra.mxu0 %v3095_v61  ;;  %v1898_v18 = vsel %vm614_vm3, %v4131_v53, 0.0 }
 0x7c7   : > { %3100 = vmatprep.subr.bf16.mxu0 %v3099_v48  ;;  %v1889_v30 = vsel %vm614_vm3, %v3444_v4, 0.0 }
 0x7c8   : > { %1899 = vadd.xlane.f32.xlu1 %v1898_v18  ;;  %1890 = vadd.xlane.f32.xlu0 %v1889_v30  ;;  %v2199_v30 = vld [vmem:[%s4290_s2 + $0x40] sm:$0xff] }
 0x7ca   : > { %v3446_v1 = vpop.eup %3445  ;;  %3102 = vmatpush3.bf16.msra.mxu0 %v3099_v48  ;;  %v2197_v48 = vld [vmem:[%s4290_s2 + $0x30] sm:$0xff] }
 0x7cb   : > { %v1895_v43 = vsel %vm614_vm3, %v3446_v1, 0.0 }
 0x7cc   : > { %1896 = vadd.xlane.f32.xlu1 %v1895_v43 }
 0x7dd   : > { %3271 = vrot.lane.b32.xlu1 %v3637_v12, %s3474_s29 }
 0x7de   : > { %3266 = vrot.lane.b32.xlu0 %v3633_v8, %s3474_s29 }
 0x7e1   : > { %3281 = vrot.lane.b32.xlu1 %v3280_v39, %s3473_s28 }
 0x7e2   : > { %3276 = vrot.lane.b32.xlu0 %v3275_v0, %s3474_s29 }
 0x7e5   : > { %3286 = vrot.lane.b32.xlu1 %v3285_v7, %s3474_s29 }
 0x7e6   : > { %3291 = vrot.lane.b32.xlu0 %v3290_v19, %s3473_s28 }
 0x7e9   : > { %3306 = vrot.lane.b32.xlu1 %v3305_v13, %s3473_s28 }
 0x848   : > { %v1882_v8 = vpop.xlane.xlu1 %1881 }
 0x849   : > { %v1879_v12 = vpop.xlane.xlu0 %1878 }
 0x84a   : > { %3447 = vrcp.f32 %v1879_v12  ;;  %v2202_v12 = vld [vmem:[%s4290_s2 + $0x58] sm:$0xff] }
 0x84b   : > { %3449 = vrcp.f32 %v1882_v8  ;;  %v2201_v8 = vld [vmem:[%s4290_s2 + $0x50] sm:$0xff] }
 0x84d   : > { %v1888_v17 = vpop.xlane.xlu1 %1887 }
 0x851   : > { %v1894_v28 = vpop.xlane.xlu1 %1893  ;;  %v1885_v0 = vpop.xlane.xlu0 %1884 }
 0x852   : > { %3451 = vrcp.f32 %v1885_v0  ;;  %v2204_v0 = vld [vmem:[%s4290_s2 + $0x68] sm:$0xff] }
 0x853   : > { %3453 = vrcp.f32 %v1888_v17  ;;  %v3131_v17 = vpack.c.bf16 %v2202_v12, %v2201_v8 }
 0x854   : > { %v3448_v27 = vpop.eup %3447 }
 0x855   : > { %v1900_v42 = vpop.xlane.xlu1 %1899  ;;  %v1891_v26 = vpop.xlane.xlu0 %1890  ;;  %v1909_v35 = vmul.f32 %v3448_v27, %v3434_v22 }
 0x856   : > { %3455 = vrcp.f32 %v1891_v26  ;;  %v3450_v34 = vpop.eup %3449  ;;  %v2206_v26 = vld [vmem:[%s4290_s2 + $0x78] sm:$0xff] }
 0x857   : > { %2895 = vmatprep.mubr.msk.f32.mxu0 %vm614_vm3, %v1909_v35  ;;  %3457 = vrcp.f32 %v1894_v28  ;;  %v1910_v11 = vmul.f32 %v3450_v34, %v4117_v6  ;;  %v2203_v28 = vld [vmem:[%s4290_s2 + $0x60] sm:$0xff] }
 0x858   : > { %v3135_v27 = vpack.c.bf16 %v2204_v0, %v2203_v28 }
 0x859   : > { %v1897_v7 = vpop.xlane.xlu1 %1896  ;;  %v3267_v39 = vpop.permute.xlu0 %3266 }
 0x85a   : > { %v3269_v14 = vunpack.i.h.bf16 %v3267_v39  ;;  %v3268_v2 = vunpack.i.l.bf16 %v3267_v39  ;;  %3459 = vrcp.f32 %v1897_v7 }
 0x85b   : > { %3461 = vrcp.f32 %v1900_v42  ;;  %v2205_v42 = vld [vmem:[%s4290_s2 + $0x70] sm:$0xff] }
 0x85c   : > { %v3103_v19 = vpack.c.bf16 %v3269_v14, %v3268_v2  ;;  %v3452_v22 = vpop.eup %3451  ;;  %v3139_v35 = vpack.c.bf16 %v2206_v26, %v2205_v42 }
 0x85d   : > { %v3272_v38 = vpop.permute.xlu1 %3271  ;;  %v3454_v24 = vpop.eup %3453  ;;  %v1911_v63 = vmul.f32 %v3452_v22, %v3440_v49  ;;  %v2194_v49 = vld [vmem:[%s4290_s2 + $0x18] sm:$0xff] }
 0x85e   : > { %v3274_v44 = vunpack.i.h.bf16 %v3272_v38  ;;  %v3273_v13 = vunpack.i.l.bf16 %v3272_v38  ;;  %3104 = vmatprep.subr.bf16.mxu0 %v3103_v19  ;;  %v1912_v5 = vmul.f32 %v3454_v24, %v4122_v52  ;;  %v2191_v52 = vld [vmem:[%s4290_s2] sm:$0xff]  ;;  %v3277_v58 = vpop.permute.xlu0 %3276 }
 0x85f   : > { %3106 = vmatpush3.bf16.msra.mxu0 %v3103_v19  ;;  %v3111_v9 = vpack.c.bf16 %v2192_v59, %v2191_v52 }
 0x860   : > { %v3107_v15 = vpack.c.bf16 %v3274_v44, %v3273_v13  ;;  %v3456_v20 = vpop.eup %3455 }
 0x861   : > { %v3458_v21 = vpop.eup %3457  ;;  %v1913_v33 = vmul.f32 %v3456_v20, %v3444_v4  ;;  %v2198_v4 = vld [vmem:[%s4290_s2 + $0x38] sm:$0xff]  ;;  %v3282_v29 = vpop.permute.xlu1 %3281  ;;  %v3278_v20 = vunpack.i.l.bf16 %v3277_v58 }
 0x862   : > { %3108 = vmatprep.subr.bf16.mxu0 %v3107_v15  ;;  %v1914_v60 = vmul.f32 %v3458_v21, %v4126_v32  ;;  %v2193_v32 = vld [vmem:[%s4290_s2 + $0x10] sm:$0xff]  ;;  %v3123_v18 = vpack.c.bf16 %v2198_v4, %v2197_v48  ;;  %v3292_v24 = vpop.permute.xlu0 %3291  ;;  %v3284_v31 = vunpack.i.h.bf16 %v3282_v29  ;;  %v3283_v37 = vunpack.i.l.bf16 %v3282_v29 }
 0x863   : > { %3110 = vmatpush3.bf16.msra.mxu0 %v3107_v15  ;;  %v3115_v61 = vpack.c.bf16 %v2194_v49, %v2193_v32  ;;  %v3293_v32 = vunpack.i.l.bf16 %v3292_v24 }
 0x864   : > { %v3460_v23 = vpop.eup %3459  ;;  %3112 = vmatprep.subr.bf16.mxu0 %v3111_v9 }
 0x865   : > { %v3462_v56 = vpop.eup %3461  ;;  %v1915_v6 = vmul.f32 %v3460_v23, %v3446_v1  ;;  %v2200_v1 = vld [vmem:[%s4290_s2 + $0x48] sm:$0xff] }
 0x866   : > { %2896 = vmatmul.mubr.msk.f32.vlgmr.msra.gmra.mrb[32].mxu0 %vm614_vm3, %v1910_v11  ;;  %v1916_v16 = vmul.f32 %v3462_v56, %v4131_v53  ;;  %v3119_v53 = vpack.c.bf16 %v2196_v62, %v2195_v3  ;;  %v3127_v43 = vpack.c.bf16 %v2200_v1, %v2199_v30 }
 0x867   : > { %2898 = vmatprep.mubr.msk.f32.mxu0 %vm614_vm3, %v1911_v63  ;;  %3114 = vmatpush3.bf16.msra.mxu0 %v3111_v9  ;;  %v3279_v63 = vunpack.i.h.bf16 %v3277_v58 }
 0x868   : > { %3116 = vmatprep.subr.bf16.mxu0 %v3115_v61 }
 0x869   : > { %v2167_v23 = vsel %vm460_vm1, %v3791_v36, %v3279_v63  ;;  %v3294_v36 = vunpack.i.h.bf16 %v3292_v24 }
 0x86a   : > { %2899 = vmatmul.mubr.msk.f32.gmra.mrb[34].mxu0 %vm614_vm3, %v1912_v5 }
 0x86b   : > { %2901 = vmatprep.mubr.msk.f32.mxu0 %vm614_vm3, %v1913_v33  ;;  %3118 = vmatpush3.bf16.msra.mxu0 %v3115_v61 }
 0x86c   : > { %3120 = vmatprep.subr.bf16.mxu0 %v3119_v53 }
 0x86e   : > { %2902 = vmatmul.mubr.msk.f32.gmra.mrb[36].mxu0 %vm614_vm3, %v1914_v60  ;;  %v2175_v60 = vsel %vm614_vm3, %v2167_v23, %v3284_v31 }
 0x86f   : > { %2904 = vmatprep.mubr.msk.f32.mxu0 %vm614_vm3, %v1915_v6  ;;  %3122 = vmatpush3.bf16.msra.mxu0 %v3119_v53 }
 0x870   : > { %3124 = vmatprep.subr.bf16.mxu0 %v3123_v18 }
 0x872   : > { %2905 = vmatmul.mubr.msk.f32.gmra.mrb[38].mxu0 %vm614_vm3, %v1916_v16 }
 0x873   : > { %3126 = vmatpush3.bf16.msra.mxu0 %v3123_v18 }
 0x874   : > { %3128 = vmatprep.subr.bf16.mxu0 %v3127_v43 }
 0x877   : > { %3130 = vmatpush3.bf16.msra.mxu0 %v3127_v43 }
 0x878   : > { %3132 = vmatprep.subr.bf16.mxu0 %v3131_v17 }
 0x87b   : > { %3134 = vmatpush3.bf16.msra.mxu0 %v3131_v17 }
 0x87c   : > { %3136 = vmatprep.subr.bf16.mxu0 %v3135_v27 }
 0x87f   : > { %3138 = vmatpush3.bf16.msra.mxu0 %v3135_v27 }
 0x880   : > { %3140 = vmatprep.subr.bf16.mxu0 %v3139_v35 }
 0x883   : > { %3142 = vmatpush3.bf16.msra.mxu0 %v3139_v35 }
 0x939   : > { %v2897_v7 = vpop.f32.mrb[32].mxu0 }
 0x93a   : > { %v2031_v39 = vpop.f32.mrb[33].mxu0 }
 0x93b   : > { %v3295_v14 = vpack.i.bf16 %v2897_v7, %v2031_v39 }
 0x93d   : > { %3296 = vrot.lane.b32.xlu0 %v3295_v14, %s3472_s27  ;;  %v2900_v2 = vpop.f32.mrb[34].mxu0 }
 0x93e   : > { %v2041_v19 = vpop.f32.mrb[35].mxu0 }
 0x93f   : > { %v3310_v38 = vpack.i.bf16 %v2900_v2, %v2041_v19 }
 0x941   : > { %3301 = vrot.lane.b32.xlu0 %v3300_v25, %s3474_s29  ;;  %3311 = vrot.lane.b32.xlu1 %v3310_v38, %s3472_s27  ;;  %v2903_v44 = vpop.f32.mrb[36].mxu0  ;;  %v3287_v25 = vpop.permute.xlu1 %3286 }
 0x942   : > { %v2051_v13 = vpop.f32.mrb[37].mxu0  ;;  %v3288_v5 = vunpack.i.l.bf16 %v3287_v25 }
 0x943   : > { %v3320_v15 = vpack.i.bf16 %v2903_v44, %v2051_v13 }
 0x944   : > { %v2168_v52 = vsel %vm460_vm1, %v3797_v47, %v3288_v5 }
 0x945   : > { %3316 = vrot.lane.b32.xlu1 %v3315_v40, %s3474_s29  ;;  %3321 = vrot.lane.b32.xlu0 %v3320_v15, %s3472_s27  ;;  %v2906_v34 = vpop.f32.mrb[38].mxu0  ;;  %v3289_v40 = vunpack.i.h.bf16 %v3287_v25  ;;  %v3307_v21 = vpop.permute.xlu1 %3306  ;;  %v2176_v53 = vsel %vm614_vm3, %v2168_v52, %v3293_v32 }
 0x946   : > { %v2061_v22 = vpop.f32.mrb[39].mxu0  ;;  %v3309_v30 = vunpack.i.h.bf16 %v3307_v21  ;;  %v3308_v1 = vunpack.i.l.bf16 %v3307_v21 }
 0x947   : > { %v3330_v11 = vpack.i.bf16 %v2906_v34, %v2061_v22  ;;  %v2169_v59 = vsel %vm460_vm1, %v3795_v46, %v3289_v40  ;;  %v2503_v22 = vld [vmem:[%s4291_s3] ss:$0 sm:$0xff] }
 0x948   : > { %v2177_v48 = vsel %vm614_vm3, %v2169_v59, %v3294_v36 }
 0x949   : > { %3326 = vrot.lane.b32.xlu0 %v3325_v57, %s3473_s28  ;;  %3331 = vrot.lane.b32.xlu1 %v3330_v11, %s3472_s27  ;;  %v2166_v57 = vsel %vm460_vm1, %v3793_v45, %v3278_v20 }
 0x94a   : > { %v2174_v56 = vsel %vm614_vm3, %v2166_v57, %v3283_v37 }
 0x9af   : > { %v3297_v33 = vpop.permute.xlu0 %3296 }
 0x9b0   : > { %v3299_v41 = vunpack.i.h.bf16 %v3297_v33  ;;  %v3298_v10 = vunpack.i.l.bf16 %v3297_v33 }
 0x9b2   : > { %v2183_v6 = vsel %vm2182_vm4, %v2174_v56, %v3298_v10  ;;  %v2184_v16 = vsel %vm2182_vm4, %v2175_v60, %v3299_v41 }
 0x9b3   : > { %v3302_v9 = vpop.permute.xlu0 %3301  ;;  %2939 = vmatprep.mubr.f32.mxu0 %v2183_v6  ;;  %v3312_v49 = vpop.permute.xlu1 %3311 }
 0x9b4   : > { %v3304_v45 = vunpack.i.h.bf16 %v3302_v9  ;;  %v3303_v61 = vunpack.i.l.bf16 %v3302_v9  ;;  %v3314_v3 = vunpack.i.h.bf16 %v3312_v49  ;;  %v3313_v62 = vunpack.i.l.bf16 %v3312_v49  ;;  %2940 = vmatmul.mubr.f32.vlgmr.msra.gmra.mrb[40].mxu0 %v2184_v16 }
 0x9b6   : > { %v2185_v4 = vsel %vm2182_vm4, %v2176_v53, %v3313_v62  ;;  %v2186_v47 = vsel %vm2182_vm4, %v2177_v48, %v3314_v3  ;;  %v2170_v46 = vsel %vm460_vm1, %v3801_v51, %v3303_v61  ;;  %v2171_v18 = vsel %vm460_vm1, %v3799_v50, %v3304_v45 }
 0x9b7   : > { %v3317_v43 = vpop.permute.xlu1 %3316  ;;  %2942 = vmatprep.mubr.f32.mxu0 %v2185_v4  ;;  %v3322_v8 = vpop.permute.xlu0 %3321  ;;  %v2178_v27 = vsel %vm614_vm3, %v2170_v46, %v3308_v1  ;;  %v2179_v42 = vsel %vm614_vm3, %v2171_v18, %v3309_v30 }
 0x9b8   : > { %v3324_v12 = vunpack.i.h.bf16 %v3322_v8  ;;  %v3323_v17 = vunpack.i.l.bf16 %v3322_v8  ;;  %2943 = vmatmul.mubr.f32.gmra.mrb[42].mxu0 %v2186_v47  ;;  %v3319_v28 = vunpack.i.h.bf16 %v3317_v43  ;;  %v3318_v0 = vunpack.i.l.bf16 %v3317_v43 }
 0x9ba   : > { %v2187_v26 = vsel %vm2182_vm4, %v2178_v27, %v3323_v17  ;;  %v2188_v51 = vsel %vm2182_vm4, %v2179_v42, %v3324_v12  ;;  %v2172_v19 = vsel %vm460_vm1, %v3805_v55, %v3318_v0  ;;  %v2173_v38 = vsel %vm460_vm1, %v3803_v54, %v3319_v28 }
 0x9bb   : > { %v3327_v35 = vpop.permute.xlu0 %3326  ;;  %2945 = vmatprep.mubr.f32.mxu0 %v2187_v26  ;;  %v3332_v50 = vpop.permute.xlu1 %3331 }
 0x9bc   : > { %v3329_v7 = vunpack.i.h.bf16 %v3327_v35  ;;  %v3328_v39 = vunpack.i.l.bf16 %v3327_v35  ;;  %v3334_v14 = vunpack.i.h.bf16 %v3332_v50  ;;  %v3333_v2 = vunpack.i.l.bf16 %v3332_v50  ;;  %2946 = vmatmul.mubr.f32.gmra.mrb[44].mxu0 %v2188_v51 }
 0x9be   : > { %v2180_v44 = vsel %vm614_vm3, %v2172_v19, %v3328_v39  ;;  %v2181_v13 = vsel %vm614_vm3, %v2173_v38, %v3329_v7 }
 0x9bf   : > { %v2189_v15 = vsel %vm2182_vm4, %v2180_v44, %v3333_v2  ;;  %v2190_v34 = vsel %vm2182_vm4, %v2181_v13, %v3334_v14 }
 0x9c0   : > { %2948 = vmatprep.mubr.f32.mxu0 %v2189_v15 }
 0x9c1   : > { %2949 = vmatmul.mubr.f32.gmra.mrb[46].mxu0 %v2190_v34 }
 0xa87   : > { %v2941_v54 = vpop.f32.mrb[40].mxu0 }
 0xa88   : > { %v2286_v55 = vadd.f32 %v2941_v54, %v2503_v22  ;;  %v2280_v11 = vpop.f32.mrb[41].mxu0 }
 0xa89   : > { %v2281_v29 = vadd.f32 %v2503_v22, %v2280_v11 }
 0xa8a   : > { %2320 = vst.msk [vmem:[%s197_s19 + $0x8] sm:$0xff] %vm209_vm0, %v2286_v55 }
 0xa8b   : > { %2319 = vst.msk [vmem:[%s197_s19] sm:$0xff] %vm209_vm0, %v2281_v29  ;;  %v2944_v58 = vpop.f32.mrb[42].mxu0 }
 0xa8c   : > { %v2296_v25 = vadd.f32 %v2944_v58, %v2503_v22  ;;  %v2290_v24 = vpop.f32.mrb[43].mxu0 }
 0xa8d   : > { %v2291_v63 = vadd.f32 %v2503_v22, %v2290_v24 }
 0xa8e   : > { %2322 = vst.msk [vmem:[%s197_s19 + $0x18] sm:$0xff] %vm209_vm0, %v2296_v25 }
 0xa8f   : > { %2321 = vst.msk [vmem:[%s197_s19 + $0x10] sm:$0xff] %vm209_vm0, %v2291_v63  ;;  %v2947_v20 = vpop.f32.mrb[44].mxu0 }
 0xa90   : > { %v2306_v31 = vadd.f32 %v2947_v20, %v2503_v22  ;;  %v2300_v37 = vpop.f32.mrb[45].mxu0 }
 0xa91   : > { %v2301_v40 = vadd.f32 %v2503_v22, %v2300_v37 }
 0xa92   : > { %2324 = vst.msk [vmem:[%s197_s19 + $0x28] sm:$0xff] %vm209_vm0, %v2306_v31 }
 0xa93   : > { %2323 = vst.msk [vmem:[%s197_s19 + $0x20] sm:$0xff] %vm209_vm0, %v2301_v40 }
 0xa94   : > { %v2950_v5 = vpop.f32.mrb[46].mxu0 }
 0xa95   : > { %v2316_v21 = vadd.f32 %v2950_v5, %v2503_v22  ;;  %v2310_v33 = vpop.f32.mrb[47].mxu0 }
 0xa96   : > { %v2311_v23 = vadd.f32 %v2503_v22, %v2310_v33 }
 0xa97   : > { %2326 = vst.msk [vmem:[%s197_s19 + $0x38] sm:$0xff] %vm209_vm0, %v2316_v21 }
 0xa98   : > { %2325 = vst.msk [vmem:[%s197_s19 + $0x30] sm:$0xff] %vm209_vm0, %v2311_v23 }
 0xa99 PF: > { %s14_s15 = sadd.s32 1, %s3469_s15  }
 0xa9a   : > { %p11_p4 = scmp.ge.s32.totalorder %s14_s15, 4  }
 0xa9c   :  { %13 = sbr.rel (!%p11_p4) target bundleno = 1 (0x1), region = 66 }

</bundles_post_ra>
